<compile_context>
chip_gen: v7x
topology: tpu7x:2x2x1
jax: 0.10.0
libtpu: 0.0.40
codegen_flags: <defaults>
</compile_context>

<pallas_src>
import math
from functools import partial

import jax
import jax.numpy as jnp
from jax.experimental import pallas as pl
from jax.experimental.pallas import tpu as pltpu

KSIZE = 3                         # ConvKAN kernel_size
NUM_GRIDS = 8                     # FastKAN default num_grids
GRID_MIN, GRID_MAX = -2.0, 2.0    # FastKAN default grid range
DENOM = (GRID_MAX - GRID_MIN) / (NUM_GRIDS - 1)
INV_DENOM = 1.0 / DENOM
LN_EPS = 1e-5                     # nn.LayerNorm default eps


def _fastkan_conv_kernel(x_ref, gamma_ref, beta_ref, wf_ref, bias_ref, o_ref, *, d_real):
    """One spatial tile: LayerNorm + fused (SiLU-base | 8xRBF) basis + single matmul.

    x_ref:     (D_pad, TILE_L)  im2col features (rows >= d_real are zero padding)
    gamma_ref: (D_pad, 1)       LN scale   (zero on padded rows)
    beta_ref:  (D_pad, 1)       LN shift   (zero on padded rows)
    wf_ref:    (O, (G+1)*D_pad) packed [base | rbf_0 .. rbf_7] weights (zero on padded cols)
    bias_ref:  (O, 1)           base-linear bias
    o_ref:     (O, TILE_L)      lane-dense output tile
    """
    x = x_ref[...]                                               # (DP, TL) f32
    dp = x.shape[0]
    inv_d = 1.0 / d_real

    # ---- LayerNorm over the real D features (padded rows masked out) ----
    feat_mask = jax.lax.broadcasted_iota(jnp.int32, (dp, 1), 0) < d_real
    mean = jnp.sum(x, axis=0, keepdims=True) * inv_d             # (1, TL)
    xc = jnp.where(feat_mask, x - mean, 0.0)                     # padded rows -> 0
    var = jnp.sum(xc * xc, axis=0, keepdims=True) * inv_d
    xn = xc * jax.lax.rsqrt(var + LN_EPS) * gamma_ref[...] + beta_ref[...]

    # ---- base path: SiLU on the *un-normalized* input (FastKAN semantics) ----
    base = jax.nn.silu(x)                                        # padded rows stay 0

    # ---- spline path: RBF basis, division hoisted out of the loop ----
    z = xn * INV_DENOM
    parts = [base]
    for g in range(NUM_GRIDS):                                   # static unroll, G = 8
        c = GRID_MIN * INV_DENOM + g                             # grid_g / denom (python const)
        d = z - c
        parts.append(jnp.exp(-(d * d)))                          # (DP, TL)
    basis = jnp.concatenate(parts, axis=0)                       # ((G+1)*DP, TL), tile-aligned

    # ---- single fused matmul: (O, K) @ (K, TL) -> (O, TL), f32 accumulate ----
    out = jnp.dot(wf_ref[...], basis, preferred_element_type=jnp.float32) + bias_ref[...]
    o_ref[...] = out.astype(o_ref.dtype)


def _im2col_nchw(x):
    """F.unfold(x, k=3, pad=1, stride=1) ordering (c, kh, kw)-major, kept as (B, D, L)."""
    # TODO(synk): for large H/W/C, form the 9 taps in-kernel from a halo-aware BlockSpec instead
    # of materializing the 9x-expanded im2col matrix in HBM.
    B, C, H, W = x.shape
    xp = jnp.pad(x, ((0, 0), (0, 0), (1, 1), (1, 1)))
    taps = [xp[:, :, kh:kh + H, kw:kw + W] for kh in range(KSIZE) for kw in range(KSIZE)]
    cols = jnp.stack(taps, axis=2)                               # (B, C, 9, H, W)
    return cols.reshape(B, C * KSIZE * KSIZE, H * W)             # (B, D, L)


def _pick_tile_l(L, cap=1024):
    """Largest multiple of 128 that divides L (capped); fall back to full L."""
    if L % 128 != 0:
        return L
    t = min(L, max(128, (cap // 128) * 128))
    while L % t != 0:
        t -= 128
    return t


def conv_kan_fast(x, params, out_channels, max_tile_l=1024):
    B, C, H, W = x.shape
    D = C * KSIZE * KSIZE
    DP = ((D + 7) // 8) * 8                                      # pad features to sublane multiple
    L = H * W
    gamma_p, beta_p, w_fused, bias = params

    patches = _im2col_nchw(x).astype(jnp.float32)                # (B, D, L)
    if DP > D:
        patches = jnp.pad(patches, ((0, 0), (0, DP - D), (0, 0)))

    tile_l = _pick_tile_l(L, max_tile_l)
    grid = (B, L // tile_l)                                      # both axes independent

    out = pl.pallas_call(
        partial(_fastkan_conv_kernel, d_real=D),
        out_shape=jax.ShapeDtypeStruct((B, out_channels, L), jnp.float32),
        grid_spec=pltpu.PrefetchScalarGridSpec(
            num_scalar_prefetch=0,
            grid=grid,
            in_specs=[
                pl.BlockSpec((None, DP, tile_l), lambda b, l: (b, 0, l)),           # patches tile
                pl.BlockSpec((DP, 1), lambda b, l: (0, 0)),                         # LN gamma
                pl.BlockSpec((DP, 1), lambda b, l: (0, 0)),                         # LN beta
                pl.BlockSpec((out_channels, (NUM_GRIDS + 1) * DP),
                             lambda b, l: (0, 0)),                                  # fused weights
                pl.BlockSpec((out_channels, 1), lambda b, l: (0, 0)),               # base bias
            ],
            out_specs=pl.BlockSpec((None, out_channels, tile_l), lambda b, l: (b, 0, l)),
        ),
        compiler_params=pltpu.CompilerParams(
            dimension_semantics=("parallel", "parallel")),
    )(patches, gamma_p, beta_p, w_fused, bias)

    # already (B, O, L): just fold spatially, no transpose needed
    return out.reshape(B, out_channels, H, W)


def init_params(key, in_channels, out_channels):
    """Synthetic init matching the PyTorch parameter shapes, pre-packed for the fused kernel."""
    D = in_channels * KSIZE * KSIZE
    DP = ((D + 7) // 8) * 8
    pad = DP - D
    k1, k2, k3 = jax.random.split(key, 3)

    gamma = jnp.ones((D,), jnp.float32)                          # nn.LayerNorm defaults
    beta = jnp.zeros((D,), jnp.float32)
    # SplineLinear weight: (O, D*G), trunc_normal(std=0.1); column index = d*G + g
    sw = 0.1 * jax.random.truncated_normal(k1, -2.0, 2.0, (out_channels, D * NUM_GRIDS), jnp.float32)
    # base nn.Linear(D, O): U(-1/sqrt(D), 1/sqrt(D)) weight and bias
    bound = 1.0 / math.sqrt(D)
    base_w = jax.random.uniform(k2, (out_channels, D), jnp.float32, -bound, bound)
    base_b = jax.random.uniform(k3, (out_channels,), jnp.float32, -bound, bound)

    gamma_p = jnp.pad(gamma, (0, pad)).reshape(DP, 1)
    beta_p = jnp.pad(beta, (0, pad)).reshape(DP, 1)
    ws = sw.reshape(out_channels, D, NUM_GRIDS).transpose(0, 2, 1)     # (O, G, D)
    ws_p = jnp.pad(ws, ((0, 0), (0, 0), (0, pad)))                     # (O, G, DP)
    wb_p = jnp.pad(base_w, ((0, 0), (0, pad)))[:, None, :]             # (O, 1, DP)
    w_fused = jnp.concatenate([wb_p, ws_p], axis=1).reshape(out_channels, (NUM_GRIDS + 1) * DP)
    bias = base_b.reshape(out_channels, 1)
    return gamma_p, beta_p, w_fused, bias


def conv_kan_fast_ref(x, params, out_channels):
    """Pure-JAX reference of the same math (for correctness check)."""
    B, C, H, W = x.shape
    D = C * KSIZE * KSIZE
    DP = ((D + 7) // 8) * 8
    pad = DP - D
    gamma_p, beta_p, w_fused, bias = params
    gamma = gamma_p[:D, 0]
    beta = beta_p[:D, 0]

    p = _im2col_nchw(x).astype(jnp.float32)                      # (B, D, L)
    mean = jnp.mean(p, axis=1, keepdims=True)
    var = jnp.mean((p - mean) ** 2, axis=1, keepdims=True)
    xn = (p - mean) * jax.lax.rsqrt(var + LN_EPS) * gamma[None, :, None] + beta[None, :, None]
    base = jax.nn.silu(p)
    z = xn * INV_DENOM
    parts = [jnp.pad(base, ((0, 0), (0, pad), (0, 0)))]
    for g in range(NUM_GRIDS):
        d = z - (GRID_MIN * INV_DENOM + g)
        parts.append(jnp.pad(jnp.exp(-(d * d)), ((0, 0), (0, pad), (0, 0))))
    basis = jnp.concatenate(parts, axis=1)                       # (B, (G+1)*DP, L)
    out = jnp.einsum('ok,bkl->bol', w_fused, basis) + bias[None, :, :]
    return out.reshape(B, out_channels, H, W)


if __name__ == "__main__":
    # TODO(synk): conv1 (KAN_Convolutional_Layer), conv2, flat and kan1 are dead code in forward();
    # only the ConvKAN('Fast') path is implemented.
    key = jax.random.PRNGKey(0)
    kx, kp = jax.random.split(key)
    B, C, H, W = 2, 4, 16, 16          # input_channels = 4
    OUT_CH = 8                         # output_channles = 8
    x = jax.random.normal(kx, (B, C, H, W), dtype=jnp.float32)
    params = init_params(kp, C, OUT_CH)

    y = conv_kan_fast(x, params, OUT_CH)
    jax.block_until_ready(y)
    assert y.shape == (B, OUT_CH, H, W) and y.dtype == jnp.float32

    y_ref = conv_kan_fast_ref(x, params, OUT_CH)
    max_err = float(jnp.max(jnp.abs(y - y_ref)))
    assert max_err < 1e-3, f"max abs error {max_err}"
    print("KERNEL_OK")
</pallas_src>

<mosaic_0001>
module attributes {stable_mosaic.version = 11 : i64} {
  func.func @_fastkan_conv_kernel(%arg0: i32, %arg1: i32, %arg2: memref<1x40x256xf32, #tpu.memory_space<vmem>>, %arg3: memref<40x1xf32, #tpu.memory_space<vmem>>, %arg4: memref<40x1xf32, #tpu.memory_space<vmem>>, %arg5: memref<8x360xf32, #tpu.memory_space<vmem>>, %arg6: memref<8x1xf32, #tpu.memory_space<vmem>>, %arg7: memref<1x8x256xf32, #tpu.memory_space<vmem>>) attributes {dimension_semantics = [#tpu.dimension_semantics<parallel>, #tpu.dimension_semantics<parallel>], iteration_bounds = array<i64: 2, 1>, scalar_prefetch = 0 : i64, scratch_operands = 0 : i64, tpu.core_type = #tpu.core_type<tc>, window_params = [{transform_indices = @transform_0, window_bounds = array<i64: 1, 40, 256>}, {pipeline_mode = #tpu.pipeline_mode<synchronous>, transform_indices = @transform_1, window_bounds = array<i64: 40, 1>}, {pipeline_mode = #tpu.pipeline_mode<synchronous>, transform_indices = @transform_2, window_bounds = array<i64: 40, 1>}, {pipeline_mode = #tpu.pipeline_mode<synchronous>, transform_indices = @transform_3, window_bounds = array<i64: 8, 360>}, {pipeline_mode = #tpu.pipeline_mode<synchronous>, transform_indices = @transform_4, window_bounds = array<i64: 8, 1>}, {transform_indices = @transform_5, window_bounds = array<i64: 1, 8, 256>}]} {
    %c0 = arith.constant 0 : index
    %c0_0 = arith.constant 0 : index
    %c0_1 = arith.constant 0 : index
    %0 = vector.load %arg2[%c0, %c0_0, %c0_1] : memref<1x40x256xf32, #tpu.memory_space<vmem>>, vector<1x40x256xf32>
    %1 = vector.shape_cast %0 : vector<1x40x256xf32> to vector<40x256xf32>
    %2 = tpu.iota {dimensions = array<i32: 0>} : vector<40x1xi32>
    %c36_i32 = arith.constant 36 : i32
    %3 = vector.broadcast %c36_i32 : i32 to vector<40x1xi32>
    %4 = arith.cmpi slt, %2, %3 : vector<40x1xi32>
    %cst = arith.constant dense<0.000000e+00> : vector<256xf32>
    %5 = vector.multi_reduction <add>, %1, %cst [0] : vector<40x256xf32> to vector<256xf32>
    %6 = vector.shape_cast %5 : vector<256xf32> to vector<1x256xf32>
    %cst_2 = arith.constant 0.027777778 : f32
    %7 = vector.broadcast %cst_2 : f32 to vector<1x256xf32>
    %8 = arith.mulf %6, %7 : vector<1x256xf32>
    %9 = vector.broadcast %8 : vector<1x256xf32> to vector<40x256xf32>
    %10 = arith.subf %1, %9 : vector<40x256xf32>
    %cst_3 = arith.constant 0.000000e+00 : f32
    %11 = vector.shape_cast %4 : vector<40x1xi1> to vector<40x1xi1>
    %12 = vector.broadcast %11 : vector<40x1xi1> to vector<40x256xi1>
    %13 = vector.broadcast %cst_3 : f32 to vector<40x256xf32>
    %14 = arith.select %12, %10, %13 : vector<40x256xi1>, vector<40x256xf32>
    %15 = arith.mulf %14, %14 : vector<40x256xf32>
    %cst_4 = arith.constant dense<0.000000e+00> : vector<256xf32>
    %16 = vector.multi_reduction <add>, %15, %cst_4 [0] : vector<40x256xf32> to vector<256xf32>
    %17 = vector.shape_cast %16 : vector<256xf32> to vector<1x256xf32>
    %cst_5 = arith.constant 0.027777778 : f32
    %18 = vector.broadcast %cst_5 : f32 to vector<1x256xf32>
    %19 = arith.mulf %17, %18 : vector<1x256xf32>
    %cst_6 = arith.constant 9.99999974E-6 : f32
    %20 = vector.broadcast %cst_6 : f32 to vector<1x256xf32>
    %21 = arith.addf %19, %20 : vector<1x256xf32>
    %22 = math.rsqrt %21 : vector<1x256xf32>
    %23 = vector.broadcast %22 : vector<1x256xf32> to vector<40x256xf32>
    %24 = arith.mulf %14, %23 : vector<40x256xf32>
    %c0_7 = arith.constant 0 : index
    %c0_8 = arith.constant 0 : index
    %25 = vector.load %arg3[%c0_7, %c0_8] : memref<40x1xf32, #tpu.memory_space<vmem>>, vector<40x1xf32>
    %26 = vector.broadcast %25 : vector<40x1xf32> to vector<40x256xf32>
    %27 = arith.mulf %24, %26 : vector<40x256xf32>
    %c0_9 = arith.constant 0 : index
    %c0_10 = arith.constant 0 : index
    %28 = vector.load %arg4[%c0_9, %c0_10] : memref<40x1xf32, #tpu.memory_space<vmem>>, vector<40x1xf32>
    %29 = vector.broadcast %28 : vector<40x1xf32> to vector<40x256xf32>
    %30 = arith.addf %27, %29 : vector<40x256xf32>
    %31 = arith.negf %1 : vector<40x256xf32>
    %32 = math.exp %31 : vector<40x256xf32>
    %cst_11 = arith.constant 1.000000e+00 : f32
    %33 = vector.broadcast %cst_11 : f32 to vector<40x256xf32>
    %34 = arith.addf %33, %32 : vector<40x256xf32>
    %35 = arith.divf %33, %34 : vector<40x256xf32>
    %36 = arith.mulf %1, %35 : vector<40x256xf32>
    %cst_12 = arith.constant 1.750000e+00 : f32
    %37 = vector.broadcast %cst_12 : f32 to vector<40x256xf32>
    %38 = arith.mulf %30, %37 : vector<40x256xf32>
    %cst_13 = arith.constant -3.500000e+00 : f32
    %39 = vector.broadcast %cst_13 : f32 to vector<40x256xf32>
    %40 = arith.subf %38, %39 : vector<40x256xf32>
    %41 = arith.mulf %40, %40 : vector<40x256xf32>
    %cst_14 = arith.constant 0.000000e+00 : f32
    %42 = vector.broadcast %cst_14 : f32 to vector<40x256xf32>
    %43 = arith.subf %42, %41 : vector<40x256xf32>
    %44 = math.exp %43 : vector<40x256xf32>
    %cst_15 = arith.constant -2.500000e+00 : f32
    %45 = vector.broadcast %cst_15 : f32 to vector<40x256xf32>
    %46 = arith.subf %38, %45 : vector<40x256xf32>
    %47 = arith.mulf %46, %46 : vector<40x256xf32>
    %cst_16 = arith.constant 0.000000e+00 : f32
    %48 = vector.broadcast %cst_16 : f32 to vector<40x256xf32>
    %49 = arith.subf %48, %47 : vector<40x256xf32>
    %50 = math.exp %49 : vector<40x256xf32>
    %cst_17 = arith.constant -1.500000e+00 : f32
    %51 = vector.broadcast %cst_17 : f32 to vector<40x256xf32>
    %52 = arith.subf %38, %51 : vector<40x256xf32>
    %53 = arith.mulf %52, %52 : vector<40x256xf32>
    %cst_18 = arith.constant 0.000000e+00 : f32
    %54 = vector.broadcast %cst_18 : f32 to vector<40x256xf32>
    %55 = arith.subf %54, %53 : vector<40x256xf32>
    %56 = math.exp %55 : vector<40x256xf32>
    %cst_19 = arith.constant -5.000000e-01 : f32
    %57 = vector.broadcast %cst_19 : f32 to vector<40x256xf32>
    %58 = arith.subf %38, %57 : vector<40x256xf32>
    %59 = arith.mulf %58, %58 : vector<40x256xf32>
    %cst_20 = arith.constant 0.000000e+00 : f32
    %60 = vector.broadcast %cst_20 : f32 to vector<40x256xf32>
    %61 = arith.subf %60, %59 : vector<40x256xf32>
    %62 = math.exp %61 : vector<40x256xf32>
    %cst_21 = arith.constant 5.000000e-01 : f32
    %63 = vector.broadcast %cst_21 : f32 to vector<40x256xf32>
    %64 = arith.subf %38, %63 : vector<40x256xf32>
    %65 = arith.mulf %64, %64 : vector<40x256xf32>
    %cst_22 = arith.constant 0.000000e+00 : f32
    %66 = vector.broadcast %cst_22 : f32 to vector<40x256xf32>
    %67 = arith.subf %66, %65 : vector<40x256xf32>
    %68 = math.exp %67 : vector<40x256xf32>
    %cst_23 = arith.constant 1.500000e+00 : f32
    %69 = vector.broadcast %cst_23 : f32 to vector<40x256xf32>
    %70 = arith.subf %38, %69 : vector<40x256xf32>
    %71 = arith.mulf %70, %70 : vector<40x256xf32>
    %cst_24 = arith.constant 0.000000e+00 : f32
    %72 = vector.broadcast %cst_24 : f32 to vector<40x256xf32>
    %73 = arith.subf %72, %71 : vector<40x256xf32>
    %74 = math.exp %73 : vector<40x256xf32>
    %cst_25 = arith.constant 2.500000e+00 : f32
    %75 = vector.broadcast %cst_25 : f32 to vector<40x256xf32>
    %76 = arith.subf %38, %75 : vector<40x256xf32>
    %77 = arith.mulf %76, %76 : vector<40x256xf32>
    %cst_26 = arith.constant 0.000000e+00 : f32
    %78 = vector.broadcast %cst_26 : f32 to vector<40x256xf32>
    %79 = arith.subf %78, %77 : vector<40x256xf32>
    %80 = math.exp %79 : vector<40x256xf32>
    %cst_27 = arith.constant 3.500000e+00 : f32
    %81 = vector.broadcast %cst_27 : f32 to vector<40x256xf32>
    %82 = arith.subf %38, %81 : vector<40x256xf32>
    %83 = arith.mulf %82, %82 : vector<40x256xf32>
    %cst_28 = arith.constant 0.000000e+00 : f32
    %84 = vector.broadcast %cst_28 : f32 to vector<40x256xf32>
    %85 = arith.subf %84, %83 : vector<40x256xf32>
    %86 = math.exp %85 : vector<40x256xf32>
    %87 = tpu.concatenate %36, %44, %50, %56, %62, %68, %74, %80, %86 in 0 : vector<40x256xf32>, vector<40x256xf32>, vector<40x256xf32>, vector<40x256xf32>, vector<40x256xf32>, vector<40x256xf32>, vector<40x256xf32>, vector<40x256xf32>, vector<40x256xf32> -> vector<360x256xf32>
    %c0_29 = arith.constant 0 : index
    %c0_30 = arith.constant 0 : index
    %88 = vector.load %arg5[%c0_29, %c0_30] : memref<8x360xf32, #tpu.memory_space<vmem>>, vector<8x360xf32>
    %cst_31 = arith.constant dense<0.000000e+00> : vector<8x256xf32>
    %89 = tpu.matmul %88, %87, %cst_31 {dimension_numbers = #tpu.dot_dimension_numbers<[1], [0], [0], [1], [0, 0, 1, 1], [], []>} : vector<8x360xf32>, vector<360x256xf32>, vector<8x256xf32> -> vector<8x256xf32>
    %c0_32 = arith.constant 0 : index
    %c0_33 = arith.constant 0 : index
    %90 = vector.load %arg6[%c0_32, %c0_33] : memref<8x1xf32, #tpu.memory_space<vmem>>, vector<8x1xf32>
    %91 = vector.broadcast %90 : vector<8x1xf32> to vector<8x256xf32>
    %92 = arith.addf %89, %91 : vector<8x256xf32>
    %c0_34 = arith.constant 0 : index
    %c0_35 = arith.constant 0 : index
    %c0_36 = arith.constant 0 : index
    %93 = vector.load %arg7[%c0_34, %c0_35, %c0_36] : memref<1x8x256xf32, #tpu.memory_space<vmem>>, vector<1x8x256xf32>
    %94 = vector.shape_cast %93 : vector<1x8x256xf32> to vector<8x256xf32>
    %95 = vector.shape_cast %92 : vector<8x256xf32> to vector<1x8x256xf32>
    tpu.vector_store %arg7[%c0_34, %c0_35, %c0_36], %95 {strides = array<i32>} : memref<1x8x256xf32, #tpu.memory_space<vmem>>, vector<1x8x256xf32>,
    return
  }
  func.func @transform_0(%arg0: i32, %arg1: i32) -> (i32, i32, i32) {
    %c0_i32 = arith.constant 0 : i32
    %c0_i32_0 = arith.constant 0 : i32
    return %arg0, %c0_i32, %arg1 : i32, i32, i32
  }
  func.func @transform_1(%arg0: i32, %arg1: i32) -> (i32, i32) {
    %c0_i32 = arith.constant 0 : i32
    %c0_i32_0 = arith.constant 0 : i32
    %c0_i32_1 = arith.constant 0 : i32
    return %c0_i32, %c0_i32_0 : i32, i32
  }
  func.func @transform_2(%arg0: i32, %arg1: i32) -> (i32, i32) {
    %c0_i32 = arith.constant 0 : i32
    %c0_i32_0 = arith.constant 0 : i32
    %c0_i32_1 = arith.constant 0 : i32
    return %c0_i32, %c0_i32_0 : i32, i32
  }
  func.func @transform_3(%arg0: i32, %arg1: i32) -> (i32, i32) {
    %c0_i32 = arith.constant 0 : i32
    %c0_i32_0 = arith.constant 0 : i32
    %c0_i32_1 = arith.constant 0 : i32
    return %c0_i32, %c0_i32_0 : i32, i32
  }
  func.func @transform_4(%arg0: i32, %arg1: i32) -> (i32, i32) {
    %c0_i32 = arith.constant 0 : i32
    %c0_i32_0 = arith.constant 0 : i32
    %c0_i32_1 = arith.constant 0 : i32
    return %c0_i32, %c0_i32_0 : i32, i32
  }
  func.func @transform_5(%arg0: i32, %arg1: i32) -> (i32, i32, i32) {
    %c0_i32 = arith.constant 0 : i32
    %c0_i32_0 = arith.constant 0 : i32
    return %arg0, %c0_i32, %arg1 : i32, i32, i32
  }
}

</mosaic_0001>

<bundles_post_ra>
// kernel: tpu_custom_call.1
= control target key start
LH: loop header
LB: loop body
LE: loop exit
PB: predicated region body
PF: predicated region fallthrough
CT: control target
= control target key end

     0   :  { %10 = vsyncpa [#allocation3], 0  ;;  %s2268_s0 = inlined_call_operand.hbm [shape: f32[2,40,256], index: 0, kind: input, shape index: {}]   ;;  %s2269_s1 = inlined_call_operand.vmem [shape: f32[40,1], index: 1, kind: input, shape index: {}]   ;;  %s2270_s2 = inlined_call_operand.vmem [shape: f32[40,1], index: 2, kind: input, shape index: {}]   ;;  %s2271_s3 = inlined_call_operand.vmem [shape: f32[8,360], index: 3, kind: input, shape index: {}]   ;;  %s2272_s4 = inlined_call_operand.vmem [shape: f32[8,1], index: 4, kind: input, shape index: {}]   ;;  %s2273_s5 = inlined_call_operand.hbm [shape: f32[2,8,256], index: 5, kind: output, shape index: {}]  }
   0x1   :  { %12 = vsyncpa [#allocation3 + $0x1], 0 }
   0x2   :  { %13 = vsyncpa [#allocation4], 0 }
   0x3   :  { %15 = vsyncpa [#allocation4 + $0x1], 0  ;;  %s1821_s18 = smov 0   ;;  %s1823_s19 = smov 0  }
   0x4   :  { %s1825_s20 = smov 0   ;;  %s1827_s21 = smov 0  }
   0x5   :  { %s1829_s22 = smov 0   ;;  %s1831_s23 = smov 0  }
   0x6 LB: > { %s1200_s24 = sadd.s32 4294967295, %s1783_s23   ;;  %s1201_s25 = sadd.s32 4294967294, %s1783_s23   ;;  %s1783_s23 = sphi %s1831_s23, %s21_s23   ;;  %s1779_s22 = sphi %s1829_s22, %s2288_s22   ;;  %s1775_s21 = sphi %s1827_s21, %s2287_s21   ;;  %s1771_s20 = sphi %s1825_s20, %s2286_s20   ;;  %s1767_s19 = sphi %s1823_s19, %s2285_s19   ;;  %s1763_s18 = sphi %s1821_s18, %s2284_s18  }
   0x7   : > { %s33_s26 = sadd.s32 1, %s1779_s22  ;;  %s42_s27 = sadd.s32 1, %s1771_s20 }
   0x8   : > { %p35_p0 = scmp.ge.s32.totalorder %s33_s26, 2  ;;  %p49_p1 = scmp.ne.s32.totalorder %s1771_s20, %s1767_s19 }
   0x9   : > { %p50_p2 = scmp.eq.s32.totalorder %s1783_s23, 0  ;;  %p55_p3 = scmp.ne.s32.totalorder %s1767_s19, %s1763_s18 }
   0xa   : > { %s2290_s26 = smov (%p35_p0, %s33_s26), 0  ;;  %p56_p5 = scmp.eq.s32.totalorder %s1200_s24, 0 }
   0xb   : > { %p1862_p4 = por %p50_p2, %p49_p1  ;;  %s37_s29 = ssub.s32 %s1779_s22, %s2290_s26 }
   0xc   : > { %p165_p6 = scmp.eq.s32.totalorder %s1200_s24, 1  ;;  %p40_p7 = scmp.eq.s32.totalorder %s37_s29, 0 }
   0xd   : > { %p1868_p8 = por %p56_p5, %p55_p3  ;;  %p171_p10 = scmp.eq.s32.totalorder %s1201_s25, 1 }
   0xe   : > { %p1872_p9 = por %p165_p6, %p49_p1  ;;  %p1411_p13 = scmp.lt.s32.totalorder %s1783_s23, 2 }
   0xf   : > { %s1877_s7 = scalar_select %p40_p7, %s1771_s20, %s42_s27  }
  0x10   : > { %s2277_s6 = scalar_select %p1872_p9, 1, 0 }
  0x11   : > { %p1879_p11 = por %p171_p10, %p55_p3  ;;  %s203_s9 = sand.u32 1, %s1771_s20  }
  0x12   : > { %s1396_s10 = smul.u32 80, %s203_s9  ;;  %p1889_p0 = pnand %p1411_p13, %p1862_p4 }
  0x13   : > { %s2278_s8 = scalar_select %p1879_p11, 1, 0 }
  0x14   : > { %s1397_s11 = smul.u32 1280, %s1779_s22  ;;  %s207_s16 = scalar_lea.vmem [#allocation2], %s1396_s10 }
  0x15   : > { %s216_s17 = sshll.u32 %s207_s16, 4  ;;  %s1901_s24 = scalar_lea.sflag [#allocation3], %s203_s9  ;;  %s1898_s17 = int_to_ptr.vmem [resolvable:$true] %s216_s17 }
  0x16   : > { %s1896_s15 = scalar_lea.hbm %s2268_s0, %s1397_s11  ;;  %p1673_p3 = pneg %p1889_p0 }
  0x17   : > { %s1671_s25 = scalar_lea.hbm %s1896_s15, 1280  ;;  %s1676_s29 = scalar_lea.hbm %s2268_s0, 2560 }
  0x18   : > { %p1672_p2 = scmp.ne.s32.totalorder %s1896_s15, %s1671_s25  ;;  %p1677_p6 = scmp.lt.u32.totalorder %s1896_s15, %s2268_s0 }
  0x19   : > { %p1678_p7 = scmp.lt.u32.totalorder %s1676_s29, %s1671_s25  ;;  %p1680_p13 = scmp.lt.u32.totalorder %s1671_s25, %s1896_s15 }
  0x1a   : > { %p1674_p4 = pnand %p1673_p3, %p1672_p2 }
  0x1b   : > { %p1679_p10 = por %p1678_p7, %p1677_p6 }
  0x1c   : > { %p1675_p5 = pneg %p1674_p4 }
  0x1d   : > { %p1681_p12 = por %p1680_p13, %p1679_p10 }
  0x1f   : > { %p1682_p1 = pnand %p1681_p12, %p1675_p5 }
  0x21   : > { %1685 = shalt.err (!%p1682_p1)
}
  0x22   : > { %s1686_s9 = scalar_lea.vmem %s1898_s17, 1280  ;;  %s1785_s13 = smov [#allocation2]  }
  0x23   : > { %p1687_p2 = scmp.ne.s32.totalorder %s1898_s17, %s1686_s9  ;;  %s1691_s14 = sshll.u32 %s1785_s13, 4  ;;  %s1692_s14 = int_to_ptr.vmem [resolvable:$false] %s1691_s14 }
  0x24   : > { %s1693_s16 = scalar_lea.vmem %s1692_s14, 2560  ;;  %p1694_p9 = scmp.lt.s32.totalorder %s1898_s17, %s1692_s14 }
  0x25   : > { %p1689_p4 = pnand %p1687_p2, %p1673_p3  ;;  %p1695_p6 = scmp.lt.s32.totalorder %s1693_s16, %s1686_s9 }
  0x27   : > { %p1690_p11 = pneg %p1689_p4  ;;  %p1696_p7 = por %p1695_p6, %p1694_p9 }
  0x29   : > { %p1697_p10 = pnand %p1696_p7, %p1690_p11 }
  0x2b   : > { %1700 = shalt.err (!%p1697_p10)
}
  0x2c   : > { %s1786_s25 = smov 256   ;;  %s1787_s27 = smov 16  }
  0x2d   : > { %1406 = dma.hbm_to_vmem [thread:$0]  (!%p1889_p0), %s1896_s15, 1280, %s1898_s17, %s1901_s24, %s1786_s25, %s1786_s25, %s1787_s27  }
  0x2e   : > { %p224_p12 = scmp.lt.s32.totalorder %s1783_s23, 3  ;;  %p2280_p1 = scmp.ge.s32.totalorder %s1783_s23, 1 }
  0x30   : > { %p225_p3 = pnand %p2280_p1, %p224_p12 }
  0x31   : > { %s1933_s28 = sand.u32 (!%p225_p3), 1, %s1767_s19  }
  0x32   : > { %228 = sbr.rel (%p225_p3) target bundleno = 560 (0x230), region = 40  ;;  %s231_s11 = scalar_lea.sflag (!%p225_p3), [#allocation3], %s1933_s28 }
  0x33   : > { %s1398_s29 = smul.u32 (!%p225_p3), 80, %s1933_s28 }
  0x35   : > { %s1937_s10 = scalar_lea.vmem (!%p225_p3), [#allocation2], %s1398_s29 }
  0x39   : > { %1754 = dma.done.wait (%p1868_p8), %s231_s11, 1280  }
  0x3a   : > { %1756 = vsyncadd (%p1868_p8), %s231_s11, 4294966016  ;;  %v1788_v0 = vmov 0   ;;  %v383_v1 = vld [vmem:[%s2269_s1 + $0x8] sm:$0xff]  ;;  %v382_v2 = vld [vmem:[%s2269_s1] sm:$0xff]  ;;  %v273_v39 = vlaneseq  ;;  %vm951_vm1 = vcmask 850944   ;;  %s1206_s12 = sshll.u32 %s1933_s28, 4 }
  0x3b   : > { %1466 = vset.pattern.permute.xlu1 %v1788_v0  ;;  %1465 = vset.pattern.permute.xlu0 %v1788_v0  ;;  %v384_v3 = vld [vmem:[%s2269_s1 + $0x10] sm:$0xff]  ;;  %v422_v4 = vld [vmem:[%s2270_s2] sm:$0xff]  ;;  %v1959_v6 = vld [vmem:[%s1937_s10 + $0x8] sm:$0xff]  ;;  %s1303_s15 = sshll.u32 %s1775_s21, 8  ;;  %s260_s17 = scalar_lea.vmem [#allocation5], %s1206_s12 }
  0x3c   : > { %394 = vperm.xlu1 %1466, %v383_v1   ;;  %389 = vperm.xlu0 %1465, %v382_v2   ;;  %v1956_v5 = vld [vmem:[%s1937_s10] sm:$0xff]  ;;  %v1962_v7 = vld [vmem:[%s1937_s10 + $0x10] sm:$0xff]  ;;  %v1965_v8 = vld [vmem:[%s1937_s10 + $0x18] sm:$0xff]  ;;  %v1208_v24 = vmul.f32 -1.442695, %v1959_v6  ;;  %v274_v49 = vshrl.u32 %v273_v39, 7  ;;  %s2219_s13 = scalar_lea.hbm %s2273_s5, %s1303_s15 }
  0x3d   : > { %v1207_v9 = vmul.f32 -1.442695, %v1956_v5  ;;  %v424_v10 = vld [vmem:[%s2270_s2 + $0x10] sm:$0xff]  ;;  %v1975_v12 = vld [vmem:[%s1937_s10 + $0x28] sm:$0xff]  ;;  %v284_v13 = vadd.f32 %v1962_v7, %v1956_v5  ;;  %v294_v14 = vadd.f32 %v1965_v8, %v1959_v6  ;;  %v1209_v15 = vmul.f32 -1.442695, %v1962_v7 }
  0x3e   : > { %v1972_v11 = vld [vmem:[%s1937_s10 + $0x20] sm:$0xff]  ;;  %v423_v16 = vld [vmem:[%s2270_s2 + $0x8] sm:$0xff]  ;;  %v1986_v17 = vld [vmem:[%s1937_s10 + $0x30] sm:$0xff]  ;;  %v1210_v19 = vmul.f32 -1.442695, %v1965_v8  ;;  %v278_v62 = vadd.s32 32, %v274_v49 }
  0x3f   : > { %v1989_v18 = vld [vmem:[%s1937_s10 + $0x38] sm:$0xff]  ;;  %1467 = vpow2.f32 %v1207_v9  ;;  %v1993_v20 = vld [vmem:[%s1937_s10 + $0x40] sm:$0xff]  ;;  %v1996_v21 = vld [vmem:[%s1937_s10 + $0x48] sm:$0xff]  ;;  %v285_v22 = vadd.f32 %v284_v13, %v1972_v11  ;;  %v295_v23 = vadd.f32 %v294_v14, %v1975_v12  ;;  %v1212_v25 = vmul.f32 -1.442695, %v1975_v12  ;;  %s1116_s24 = sshll.u32 %s260_s17, 4  ;;  %s2221_s24 = int_to_ptr.vmem [resolvable:$true] %s1116_s24 }
  0x40   : > { %399 = vperm.xlu1 %1466, %v384_v3   ;;  %429 = vperm.xlu0 %1465, %v422_v4   ;;  %1469 = vpow2.f32 %v1209_v15  ;;  %v1214_v26 = vmul.f32 -1.442695, %v1989_v18  ;;  %v1211_v27 = vmul.f32 -1.442695, %v1972_v11  ;;  %v1213_v30 = vmul.f32 -1.442695, %v1986_v17 }
  0x41   : > { %1471 = vpow2.f32 %v1210_v19  ;;  %v286_v28 = vadd.f32 %v285_v22, %v1986_v17  ;;  %v296_v29 = vadd.f32 %v295_v23, %v1989_v18  ;;  %v386_v31 = vld [vmem:[%s2269_s1 + $0x20] sm:$0xff]  ;;  %v385_v32 = vld [vmem:[%s2269_s1 + $0x18] sm:$0xff]  ;;  %vm283_vm0 = vcmp.lt.s32.totalorder %v278_v62, 36  ;;  %s1100_s14 = scalar_lea.sflag [#allocation4], %s1933_s28  ;;  %s1701_s16 = scalar_lea.vmem %s2221_s24, 256 }
  0x42   : > { %1473 = vpow2.f32 %v1208_v24  ;;  %v426_v37 = vld [vmem:[%s2270_s2 + $0x20] sm:$0xff]  ;;  %v425_v38 = vld [vmem:[%s2270_s2 + $0x18] sm:$0xff]  ;;  %p1702_p8 = scmp.ne.s32.totalorder %s2221_s24, %s1701_s16  ;;  %p2281_p9 = scmp.ne.s32.totalorder %s2277_s6, 0 }
  0x43   : > { %1475 = vpow2.f32 %v1212_v25  ;;  %v287_v33 = vadd.f32 %v286_v28, %v1993_v20  ;;  %v297_v34 = vadd.f32 %v296_v29, %v1996_v21  ;;  %v945_v48 = vld [vmem:[%s2272_s4] sm:$0xff]  ;;  %s1790_s21 = smov [#allocation5]  }
  0x44   : > { %439 = vperm.xlu1 %1466, %v424_v10   ;;  %434 = vperm.xlu0 %1465, %v423_v16   ;;  %1477 = vpow2.f32 %v1214_v26  ;;  %p1703_p11 = pnand %p1702_p8, %p2281_p9  ;;  %s1705_s25 = sshll.u32 %s1790_s21, 4  ;;  %s1706_s25 = int_to_ptr.vmem [resolvable:$false] %s1705_s25 }
  0x45   : > { %1479 = vpow2.f32 %v1211_v27  ;;  %v288_v35 = vrot.slane %v287_v33, 4  ;;  %v298_v36 = vrot.slane %v297_v34, 4  ;;  %s1707_s27 = scalar_lea.vmem %s1706_s25, 512  ;;  %p1708_p5 = scmp.lt.s32.totalorder %s2221_s24, %s1706_s25 }
  0x46   : > { %1481 = vpow2.f32 %v1213_v30  ;;  %p1704_p0 = pneg %p1703_p11  ;;  %p1709_p13 = scmp.lt.s32.totalorder %s1707_s27, %s1701_s16 }
  0x47   : > { %v289_v40 = vadd.f32 %v288_v35, %v287_v33  ;;  %v299_v41 = vadd.f32 %v298_v36, %v297_v34 }
  0x48   : > { %409 = vperm.xlu1 %1466, %v386_v31   ;;  %404 = vperm.xlu0 %1465, %v385_v32   ;;  %p1710_p2 = por %p1709_p13, %p1708_p5 }
  0x49   : > { %v1468_v42 = vpop.eup %1467  ;;  %v290_v44 = vrot.slane %v289_v40, 2  ;;  %v300_v45 = vrot.slane %v299_v41, 2 }
  0x4a   : > { %v1470_v43 = vpop.eup %1469  ;;  %v492_v46 = vadd.f32 1.0, %v1468_v42  ;;  %p1711_p4 = pnand %p1710_p2, %p1704_p0 }
  0x4b   : > { %v1472_v47 = vpop.eup %1471  ;;  %v494_v50 = vadd.f32 1.0, %v1470_v43  ;;  %v291_v52 = vadd.f32 %v290_v44, %v289_v40  ;;  %v301_v53 = vadd.f32 %v300_v45, %v299_v41 }
  0x4c   : > { %449 = vperm.xlu1 %1466, %v426_v37   ;;  %444 = vperm.xlu0 %1465, %v425_v38   ;;  %v1474_v51 = vpop.eup %1473  ;;  %v495_v54 = vadd.f32 1.0, %v1472_v47  ;;  %1483 = vrcp.f32 %v492_v46 }
  0x4d   : > { %v1476_v55 = vpop.eup %1475  ;;  %v493_v56 = vadd.f32 1.0, %v1474_v51  ;;  %1485 = vrcp.f32 %v494_v50  ;;  %v292_v58 = vrot.slane %v291_v52, 1  ;;  %v302_v59 = vrot.slane %v301_v53, 1 }
  0x4e   : > { %v1478_v57 = vpop.eup %1477  ;;  %1487 = vrcp.f32 %v495_v54  ;;  %v497_v60 = vadd.f32 1.0, %v1476_v55 }
  0x4f   : > { %v1480_v61 = vpop.eup %1479  ;;  %1489 = vrcp.f32 %v493_v56  ;;  %v499_v63 = vadd.f32 1.0, %v1478_v57  ;;  %v293_v1 = vadd.f32 %v292_v58, %v291_v52  ;;  %v303_v2 = vadd.f32 %v302_v59, %v301_v53 }
  0x50   : > { %948 = vperm.xlu0 %1465, %v945_v48   ;;  %v1482_v0 = vpop.eup %1481  ;;  %1491 = vrcp.f32 %v497_v60  ;;  %v496_v3 = vadd.f32 1.0, %v1480_v61 }
  0x51   : > { %1493 = vrcp.f32 %v499_v63  ;;  %v498_v4 = vadd.f32 1.0, %v1482_v0  ;;  %v304_v9 = vmul.f32 0.027777778, %v293_v1  ;;  %v305_v10 = vmul.f32 0.027777778, %v303_v2 }
  0x52   : > { %1495 = vrcp.f32 %v496_v3 }
  0x53   : > { %1497 = vrcp.f32 %v498_v4  ;;  %v2025_v13 = vsub.f32 %v1956_v5, %v304_v9  ;;  %v2028_v14 = vsub.f32 %v1959_v6, %v305_v10  ;;  %v2031_v15 = vsub.f32 %v1962_v7, %v304_v9 }
  0x54   : > { %v2034_v16 = vsub.f32 %v1965_v8, %v305_v10  ;;  %v2037_v19 = vsub.f32 %v1972_v11, %v304_v9  ;;  %v2040_v22 = vsub.f32 %v1975_v12, %v305_v10  ;;  %v2043_v23 = vsub.f32 %v1986_v17, %v304_v9 }
  0x55   : > { %v2046_v24 = vsub.f32 %v1989_v18, %v305_v10  ;;  %v314_v26 = vsub.f32 %v1993_v20, %v304_v9  ;;  %v315_v27 = vsub.f32 %v1996_v21, %v305_v10  ;;  %v336_v28 = vmul.f32 %v2025_v13, %v2025_v13 }
  0x56   : > { %v1484_v25 = vpop.eup %1483  ;;  %v337_v29 = vmul.f32 %v2028_v14, %v2028_v14  ;;  %v338_v31 = vmul.f32 %v2031_v15, %v2031_v15  ;;  %v339_v32 = vmul.f32 %v2034_v16, %v2034_v16  ;;  %v340_v33 = vmul.f32 %v2037_v19, %v2037_v19 }
  0x57   : > { %v1486_v30 = vpop.eup %1485  ;;  %v341_v34 = vmul.f32 %v2040_v22, %v2040_v22  ;;  %v2063_v36 = vsel %vm283_vm0, %v314_v26, 0.0  ;;  %v335_v37 = vsel %vm283_vm0, %v315_v27, 0.0  ;;  %v342_v38 = vmul.f32 %v2043_v23, %v2043_v23 }
  0x58   : > { %v1488_v35 = vpop.eup %1487  ;;  %v343_v40 = vmul.f32 %v2046_v24, %v2046_v24  ;;  %v344_v41 = vmul.f32 %v2063_v36, %v2063_v36  ;;  %v346_v42 = vadd.f32 %v338_v31, %v336_v28  ;;  %v356_v43 = vadd.f32 %v339_v32, %v337_v29 }
  0x59   : > { %v1490_v39 = vpop.eup %1489  ;;  %v525_v46 = vmul.f32 %v1488_v35, %v1965_v8  ;;  %v522_v47 = vmul.f32 %v1484_v25, %v1956_v5  ;;  %v524_v48 = vmul.f32 %v1486_v30, %v1962_v7  ;;  %v345_v50 = vmul.f32 %v335_v37, %v335_v37 }
  0x5a   : > { %v1492_v44 = vpop.eup %1491  ;;  %v523_v45 = vmul.f32 %v1490_v39, %v1959_v6  ;;  %v347_v51 = vadd.f32 %v346_v42, %v340_v33  ;;  %v357_v52 = vadd.f32 %v356_v43, %v341_v34  ;;  %v1216_v42 = vmul.f32 -1.442695, %v1996_v21 }
  0x5b   : > { %v1494_v49 = vpop.eup %1493  ;;  %v527_v53 = vmul.f32 %v1492_v44, %v1975_v12  ;;  %v1306_v56 = vpack.c.bf16 %v524_v48, %v522_v47  ;;  %v1215_v43 = vmul.f32 -1.442695, %v1993_v20 }
  0x5c   : > { %v1496_v54 = vpop.eup %1495  ;;  %v1304_v55 = vpack.c.bf16 %v525_v46, %v523_v45  ;;  %v529_v57 = vmul.f32 %v1494_v49, %v1989_v18  ;;  %v348_v59 = vadd.f32 %v347_v51, %v342_v38  ;;  %v358_v6 = vadd.f32 %v357_v52, %v343_v40 }
  0x5d   : > { %v1498_v58 = vpop.eup %1497  ;;  %v526_v8 = vmul.f32 %v1496_v54, %v1972_v11 }
  0x5e   : > { %1305 = vmatprep.subr.bf16.mxu1 %v1304_v55  ;;  %v1308_v5 = vpack.c.bf16 %v529_v57, %v527_v53  ;;  %v528_v7 = vmul.f32 %v1498_v58, %v1986_v17  ;;  %v349_v60 = vadd.f32 %v348_v59, %v344_v41  ;;  %v359_v61 = vadd.f32 %v358_v6, %v345_v50 }
  0x5f   : > { %1307 = vmatpush1.bf16.msra.mxu1 %v1306_v56 }
  0x60   : > { %1309 = vmatprep.subr.bf16.mxu1 %v1308_v5  ;;  %v1310_v62 = vpack.c.bf16 %v528_v7, %v526_v8  ;;  %v350_v12 = vrot.slane %v349_v60, 4  ;;  %v360_v63 = vrot.slane %v359_v61, 4 }
  0x62   : > { %v351_v0 = vadd.f32 %v350_v12, %v349_v60  ;;  %v361_v1 = vadd.f32 %v360_v63, %v359_v61 }
  0x63   : > { %1311 = vmatpush1.bf16.msra.mxu1 %v1310_v62 }
  0x64   : > { %v352_v18 = vrot.slane %v351_v0, 2  ;;  %v362_v2 = vrot.slane %v361_v1, 2 }
  0x66   : > { %v353_v3 = vadd.f32 %v352_v18, %v351_v0  ;;  %v363_v4 = vadd.f32 %v362_v2, %v361_v1  ;;  %v943_v0 = vld [vmem:[%s2271_s3 + $0x8] sm:$0xff] }
  0x67   : > { %1019 = vmatprep.mubr.f32.mxu1 %v943_v0 }
  0x68   : > { %v354_v9 = vrot.slane %v353_v3, 1  ;;  %v364_v11 = vrot.slane %v363_v4, 1 }
  0x6a   : > { %v355_v10 = vadd.f32 %v354_v9, %v353_v3  ;;  %v365_v25 = vadd.f32 %v364_v11, %v363_v4 }
  0x6c   : > { %v366_v26 = vmul.f32 0.027777778, %v355_v10  ;;  %v367_v17 = vmul.f32 0.027777778, %v365_v25 }
  0x6e   : > { %v368_v27 = vadd.f32 1e-05, %v366_v26  ;;  %v369_v28 = vadd.f32 1e-05, %v367_v17 }
  0x70   : > { %1499 = vrsqrt.f32 %v368_v27 }
  0x71   : > { %1501 = vrsqrt.f32 %v369_v28 }
  0x72   : > { %1503 = vpow2.f32 %v1216_v42 }
  0x73   : > { %1505 = vpow2.f32 %v1215_v43 }
  0x7a   : > { %v1500_v29 = vpop.eup %1499 }
  0x7b   : > { %v1502_v30 = vpop.eup %1501  ;;  %v374_v31 = vmul.f32 %v1500_v29, %v2031_v15  ;;  %v372_v32 = vmul.f32 %v1500_v29, %v2025_v13  ;;  %v376_v33 = vmul.f32 %v1500_v29, %v2037_v19  ;;  %v378_v40 = vmul.f32 %v1500_v29, %v2043_v23 }
  0x7c   : > { %v375_v34 = vmul.f32 %v1502_v30, %v2034_v16  ;;  %v373_v35 = vmul.f32 %v1502_v30, %v2028_v14  ;;  %v377_v38 = vmul.f32 %v1502_v30, %v2040_v22  ;;  %v381_v39 = vmul.f32 %v1502_v30, %v335_v37  ;;  %v1504_v13 = vpop.eup %1503 }
  0x7d   : > { %v379_v41 = vmul.f32 %v1502_v30, %v2046_v24  ;;  %v1506_v15 = vpop.eup %1505  ;;  %v501_v19 = vadd.f32 1.0, %v1504_v13  ;;  %v380_v57 = vmul.f32 %v1500_v29, %v2063_v36 }
  0x7e   : > { %v500_v44 = vadd.f32 1.0, %v1506_v15 }
  0x7f   : > { %1507 = vrcp.f32 %v501_v19 }
  0x80   : > { %1509 = vrcp.f32 %v500_v44 }
  0x89   : > { %v1508_v45 = vpop.eup %1507 }
  0x8a   : > { %v1510_v24 = vpop.eup %1509  ;;  %v2096_v58 = vmul.f32 %v1508_v45, %v1996_v21 }
  0x8b   : > { %v2099_v59 = vmul.f32 %v1510_v24, %v1993_v20 }
  0xbb   : > { %v395_v14 = vpop.permute.xlu1 %394  ;;  %v390_v16 = vpop.permute.xlu0 %389 }
  0xbc   : > { %v412_v22 = vmul.f32 %v390_v16, %v372_v32  ;;  %v413_v37 = vmul.f32 %v390_v16, %v373_v35  ;;  %v414_v49 = vmul.f32 %v395_v14, %v374_v31  ;;  %v415_v50 = vmul.f32 %v395_v14, %v375_v34 }
  0xbf   : > { %v400_v23 = vpop.permute.xlu1 %399  ;;  %v430_v46 = vpop.permute.xlu0 %429 }
  0xc0   : > { %v452_v47 = vadd.f32 %v430_v46, %v412_v22  ;;  %v453_v48 = vadd.f32 %v430_v46, %v413_v37  ;;  %v416_v51 = vmul.f32 %v400_v23, %v376_v33  ;;  %v417_v52 = vmul.f32 %v400_v23, %v377_v38 }
  0xc2   : > { %v2090_v53 = vmul.f32 1.75, %v452_v47  ;;  %v2092_v54 = vmul.f32 1.75, %v453_v48 }
  0xc3   : > { %v440_v55 = vpop.permute.xlu1 %439  ;;  %v435_v56 = vpop.permute.xlu0 %434 }
  0xc4   : > { %v456_v6 = vadd.f32 %v440_v55, %v416_v51  ;;  %v457_v8 = vadd.f32 %v440_v55, %v417_v52  ;;  %v454_v5 = vadd.f32 %v435_v56, %v414_v49  ;;  %v455_v7 = vadd.f32 %v435_v56, %v415_v50 }
  0xc5   : > { %v1218_v60 = vadd.f32 3.5, %v2092_v54  ;;  %v1217_v61 = vadd.f32 3.5, %v2090_v53  ;;  %v1228_v62 = vadd.f32 2.5, %v2092_v54  ;;  %v1278_v12 = vadd.f32 -2.5, %v2092_v54 }
  0xc6   : > { %v2105_v63 = vmul.f32 1.75, %v456_v6  ;;  %v2107_v36 = vmul.f32 1.75, %v457_v8  ;;  %v2109_v21 = vmul.f32 1.75, %v454_v5  ;;  %v2111_v20 = vmul.f32 1.75, %v455_v7 }
  0xc7   : > { %v410_v1 = vpop.permute.xlu1 %409  ;;  %v405_v18 = vpop.permute.xlu0 %404  ;;  %v553_v2 = vmul.f32 %v1218_v60, %v1218_v60  ;;  %v552_v3 = vmul.f32 %v1217_v61, %v1217_v61  ;;  %v2116_v4 = vmul.f32 %v1228_v62, %v1228_v62  ;;  %v2118_v9 = vmul.f32 %v1278_v12, %v1278_v12 }
  0xc8   : > { %v420_v11 = vmul.f32 %v410_v1, %v380_v57  ;;  %v421_v10 = vmul.f32 %v410_v1, %v381_v39  ;;  %v418_v25 = vmul.f32 %v405_v18, %v378_v40  ;;  %v419_v26 = vmul.f32 %v405_v18, %v379_v41 }
  0xc9   : > { %v563_v17 = vsub.f32 0.0, %v553_v2  ;;  %v562_v27 = vsub.f32 0.0, %v552_v3  ;;  %v1220_v28 = vadd.f32 3.5, %v2111_v20  ;;  %v1222_v29 = vadd.f32 3.5, %v2107_v36 }
  0xca   : > { %v1219_v30 = vadd.f32 3.5, %v2109_v21  ;;  %v1221_v31 = vadd.f32 3.5, %v2105_v63  ;;  %v1272_v32 = vadd.f32 -1.5, %v2107_v36  ;;  %v1271_v33 = vadd.f32 -1.5, %v2105_v63 }
  0xcb   : > { %v450_v34 = vpop.permute.xlu1 %449  ;;  %v445_v35 = vpop.permute.xlu0 %444  ;;  %v574_v38 = vmul.f32 1.442695, %v563_v17  ;;  %v572_v39 = vmul.f32 1.442695, %v562_v27  ;;  %v555_v40 = vmul.f32 %v1220_v28, %v1220_v28  ;;  %v557_v41 = vmul.f32 %v1222_v29, %v1222_v29 }
  0xcc   : > { %v460_v42 = vadd.f32 %v450_v34, %v420_v11  ;;  %v461_v43 = vadd.f32 %v450_v34, %v421_v10  ;;  %v458_v13 = vadd.f32 %v445_v35, %v418_v25  ;;  %v459_v15 = vadd.f32 %v445_v35, %v419_v26 }
  0xcd   : > { %1511 = vpow2.f32 %v574_v38  ;;  %v565_v19 = vsub.f32 0.0, %v555_v40  ;;  %v567_v44 = vsub.f32 0.0, %v557_v41  ;;  %v554_v14 = vmul.f32 %v1219_v30, %v1219_v30 }
  0xce   : > { %v2126_v16 = vmul.f32 1.75, %v460_v42  ;;  %v2128_v22 = vmul.f32 1.75, %v461_v43  ;;  %v2130_v37 = vmul.f32 1.75, %v458_v13  ;;  %v2132_v45 = vmul.f32 1.75, %v459_v15 }
  0xcf   : > { %1513 = vpow2.f32 %v572_v39  ;;  %v578_v23 = vmul.f32 1.442695, %v565_v19  ;;  %v582_v46 = vmul.f32 1.442695, %v567_v44  ;;  %v556_v24 = vmul.f32 %v1221_v31, %v1221_v31 }
  0xd0   : > { %v564_v47 = vsub.f32 0.0, %v554_v14  ;;  %v1224_v48 = vadd.f32 3.5, %v2132_v45  ;;  %v1226_v49 = vadd.f32 3.5, %v2128_v22  ;;  %v1274_v50 = vadd.f32 -1.5, %v2132_v45 }
  0xd1   : > { %1515 = vpow2.f32 %v578_v23  ;;  %v566_v51 = vsub.f32 0.0, %v556_v24  ;;  %v807_v52 = vmul.f32 %v1272_v32, %v1272_v32  ;;  %v1223_v55 = vadd.f32 3.5, %v2130_v37 }
  0xd2   : > { %1517 = vpow2.f32 %v582_v46  ;;  %v576_v56 = vmul.f32 1.442695, %v564_v47  ;;  %v559_v57 = vmul.f32 %v1224_v48, %v1224_v48  ;;  %v561_v6 = vmul.f32 %v1226_v49, %v1226_v49 }
  0xd3   : > { %v580_v8 = vmul.f32 1.442695, %v566_v51  ;;  %v809_v5 = vmul.f32 %v1274_v50, %v1274_v50  ;;  %v817_v7 = vsub.f32 0.0, %v807_v52  ;;  %v1225_v60 = vadd.f32 3.5, %v2126_v16 }
  0xd4   : > { %1519 = vpow2.f32 %v576_v56  ;;  %v569_v61 = vsub.f32 0.0, %v559_v57  ;;  %v571_v62 = vsub.f32 0.0, %v561_v6  ;;  %v558_v12 = vmul.f32 %v1223_v55, %v1223_v55 }
  0xd5   : > { %1521 = vpow2.f32 %v580_v8  ;;  %v819_v0 = vsub.f32 0.0, %v809_v5  ;;  %v832_v1 = vmul.f32 1.442695, %v817_v7  ;;  %v560_v18 = vmul.f32 %v1225_v60, %v1225_v60 }
  0xd6   : > { %v586_v2 = vmul.f32 1.442695, %v569_v61  ;;  %v590_v3 = vmul.f32 1.442695, %v571_v62  ;;  %v568_v11 = vsub.f32 0.0, %v558_v12  ;;  %v1273_v10 = vadd.f32 -1.5, %v2130_v37 }
  0xd7   : > { %v1512_v25 = vpop.eup %1511  ;;  %1523 = vpow2.f32 %v832_v1  ;;  %v836_v26 = vmul.f32 1.442695, %v819_v0  ;;  %v570_v17 = vsub.f32 0.0, %v560_v18  ;;  %v806_v27 = vmul.f32 %v1271_v33, %v1271_v33 }
  0xd8   : > { %v1312_v28 = vpack.c.bf16 %v1512_v25, %v2096_v58  ;;  %1525 = vpow2.f32 %v586_v2  ;;  %v584_v29 = vmul.f32 1.442695, %v568_v11  ;;  %v808_v30 = vmul.f32 %v1273_v10, %v1273_v10 }
  0xd9   : > { %v1514_v31 = vpop.eup %1513  ;;  %1527 = vpow2.f32 %v590_v3  ;;  %v588_v32 = vmul.f32 1.442695, %v570_v17  ;;  %v816_v34 = vsub.f32 0.0, %v806_v27  ;;  %v1230_v35 = vadd.f32 2.5, %v2111_v20 }
  0xda   : > { %1313 = vmatprep.subr.bf16.mxu1 %v1312_v28  ;;  %v1314_v38 = vpack.c.bf16 %v1514_v31, %v2099_v59  ;;  %1529 = vpow2.f32 %v836_v26  ;;  %v818_v39 = vsub.f32 0.0, %v808_v30  ;;  %v613_v40 = vsub.f32 0.0, %v2116_v4 }
  0xdb   : > { %v1516_v41 = vpop.eup %1515  ;;  %1531 = vpow2.f32 %v584_v29  ;;  %v830_v33 = vmul.f32 1.442695, %v816_v34  ;;  %v605_v58 = vmul.f32 %v1230_v35, %v1230_v35  ;;  %v1276_v42 = vadd.f32 -1.5, %v2128_v22 }
  0xdc   : > { %v1518_v43 = vpop.eup %1517  ;;  %1315 = vmatpush1.bf16.msra.mxu1 %v1314_v38  ;;  %1533 = vpow2.f32 %v588_v32  ;;  %v834_v13 = vmul.f32 1.442695, %v818_v39  ;;  %v624_v15 = vmul.f32 1.442695, %v613_v40  ;;  %v863_v19 = vsub.f32 0.0, %v2118_v9 }
  0xdd   : > { %v1316_v44 = vpack.c.bf16 %v1518_v43, %v1516_v41  ;;  %1535 = vpow2.f32 %v830_v33  ;;  %v615_v59 = vsub.f32 0.0, %v605_v58  ;;  %v811_v14 = vmul.f32 %v1276_v42, %v1276_v42 }
  0xde   : > { %v1520_v23 = vpop.eup %1519  ;;  %1537 = vpow2.f32 %v834_v13  ;;  %v874_v4 = vmul.f32 1.442695, %v863_v19  ;;  %v1227_v46 = vadd.f32 2.5, %v2090_v53  ;;  %v1229_v24 = vadd.f32 2.5, %v2109_v21 }
  0xdf   : > { %v1522_v47 = vpop.eup %1521  ;;  %1317 = vmatprep.subr.bf16.mxu1 %v1316_v44  ;;  %1539 = vpow2.f32 %v624_v15  ;;  %v628_v48 = vmul.f32 1.442695, %v615_v59  ;;  %v821_v49 = vsub.f32 0.0, %v811_v14  ;;  %v1275_v50 = vadd.f32 -1.5, %v2126_v16 }
  0xe0   : > { %v1318_v51 = vpack.c.bf16 %v1522_v47, %v1520_v23  ;;  %1541 = vpow2.f32 %v874_v4  ;;  %v602_v9 = vmul.f32 %v1227_v46, %v1227_v46  ;;  %v604_v52 = vmul.f32 %v1229_v24, %v1229_v24 }
  0xe1   : > { %v1524_v55 = vpop.eup %1523  ;;  %1543 = vpow2.f32 %v628_v48  ;;  %v840_v56 = vmul.f32 1.442695, %v821_v49  ;;  %v810_v57 = vmul.f32 %v1275_v50, %v1275_v50  ;;  %v1277_v6 = vadd.f32 -2.5, %v2090_v53 }
  0xe2   : > { %v1526_v8 = vpop.eup %1525  ;;  %1319 = vmatpush1.bf16.msra.mxu1 %v1318_v51  ;;  %v612_v5 = vsub.f32 0.0, %v602_v9  ;;  %v614_v7 = vsub.f32 0.0, %v604_v52  ;;  %v1232_v60 = vadd.f32 2.5, %v2107_v36  ;;  %v1234_v61 = vadd.f32 2.5, %v2132_v45 }
  0xe3   : > { %v1528_v62 = vpop.eup %1527  ;;  %1545 = vpow2.f32 %v840_v56  ;;  %v820_v12 = vsub.f32 0.0, %v810_v57  ;;  %v852_v0 = vmul.f32 %v1277_v6, %v1277_v6  ;;  %v1280_v1 = vadd.f32 -2.5, %v2111_v20 }
  0xe4   : > { %v1530_v18 = vpop.eup %1529  ;;  %v1320_v2 = vpack.c.bf16 %v1528_v62, %v1526_v8  ;;  %v622_v3 = vmul.f32 1.442695, %v612_v5  ;;  %v626_v11 = vmul.f32 1.442695, %v614_v7  ;;  %v607_v10 = vmul.f32 %v1232_v60, %v1232_v60 }
  0xe5   : > { %v1532_v25 = vpop.eup %1531  ;;  %v1368_v26 = vpack.c.bf16 %v1530_v18, %v1524_v55  ;;  %v838_v17 = vmul.f32 1.442695, %v820_v12  ;;  %v862_v27 = vsub.f32 0.0, %v852_v0  ;;  %v609_v28 = vmul.f32 %v1234_v61, %v1234_v61 }
  0xe6   : > { %v1534_v29 = vpop.eup %1533  ;;  %1321 = vmatprep.subr.bf16.mxu1 %v1320_v2  ;;  %1547 = vpow2.f32 %v622_v3  ;;  %v617_v30 = vsub.f32 0.0, %v607_v10  ;;  %v1282_v31 = vadd.f32 -2.5, %v2107_v36  ;;  %v855_v32 = vmul.f32 %v1280_v1, %v1280_v1 }
  0xe7   : > { %v1536_v34 = vpop.eup %1535  ;;  %1369 = vmatprep.subr.bf16.mxu0 %v1368_v26  ;;  %v1322_v35 = vpack.c.bf16 %v1534_v29, %v1532_v25  ;;  %1549 = vpow2.f32 %v626_v11  ;;  %v872_v38 = vmul.f32 1.442695, %v862_v27  ;;  %v619_v39 = vsub.f32 0.0, %v609_v28 }
  0xe8   : > { %v1538_v40 = vpop.eup %1537  ;;  %1551 = vpow2.f32 %v838_v17  ;;  %v632_v41 = vmul.f32 1.442695, %v617_v30  ;;  %v857_v33 = vmul.f32 %v1282_v31, %v1282_v31  ;;  %v865_v58 = vsub.f32 0.0, %v855_v32 }
  0xe9   : > { %v1540_v42 = vpop.eup %1539  ;;  %1323 = vmatpush1.bf16.msra.mxu1 %v1322_v35  ;;  %v1370_v43 = vpack.c.bf16 %v1538_v40, %v1536_v34  ;;  %1553 = vpow2.f32 %v872_v38  ;;  %v636_v13 = vmul.f32 1.442695, %v619_v39  ;;  %v1231_v15 = vadd.f32 2.5, %v2105_v63 }
  0xea   : > { %v1542_v19 = vpop.eup %1541  ;;  %1555 = vpow2.f32 %v632_v41  ;;  %v867_v44 = vsub.f32 0.0, %v857_v33  ;;  %v878_v59 = vmul.f32 1.442695, %v865_v58  ;;  %v1233_v14 = vadd.f32 2.5, %v2130_v37 }
  0xeb   : > { %v1544_v23 = vpop.eup %1543  ;;  %1371 = vmatpush1.bf16.msra.mxu0 %v1370_v43  ;;  %1557 = vpow2.f32 %v636_v13  ;;  %v606_v4 = vmul.f32 %v1231_v15, %v1231_v15  ;;  %v1279_v46 = vadd.f32 -2.5, %v2109_v21  ;;  %v1281_v24 = vadd.f32 -2.5, %v2105_v63 }
  0xec   : > { %v1324_v47 = vpack.c.bf16 %v1544_v23, %v1540_v42  ;;  %1559 = vpow2.f32 %v878_v59  ;;  %v882_v48 = vmul.f32 1.442695, %v867_v44  ;;  %v608_v49 = vmul.f32 %v1233_v14, %v1233_v14 }
  0xed   : > { %v1546_v50 = vpop.eup %1545  ;;  %v616_v51 = vsub.f32 0.0, %v606_v4  ;;  %v854_v9 = vmul.f32 %v1279_v46, %v1279_v46  ;;  %v856_v52 = vmul.f32 %v1281_v24, %v1281_v24  ;;  %v1236_v55 = vadd.f32 2.5, %v2128_v22 }
  0xee   : > { %1325 = vmatprep.subr.bf16.mxu1 %v1324_v47  ;;  %v1372_v56 = vpack.c.bf16 %v1542_v19, %v1546_v50  ;;  %1561 = vpow2.f32 %v882_v48  ;;  %v618_v57 = vsub.f32 0.0, %v608_v49  ;;  %v1238_v6 = vadd.f32 1.5, %v2092_v54 }
  0xef   : > { %v630_v8 = vmul.f32 1.442695, %v616_v51  ;;  %v864_v5 = vsub.f32 0.0, %v854_v9  ;;  %v866_v7 = vsub.f32 0.0, %v856_v52  ;;  %v611_v60 = vmul.f32 %v1236_v55, %v1236_v55 }
  0xf0   : > { %v1548_v61 = vpop.eup %1547  ;;  %1373 = vmatprep.subr.bf16.mxu0 %v1372_v56  ;;  %v634_v62 = vmul.f32 1.442695, %v618_v57  ;;  %v653_v12 = vmul.f32 %v1238_v6, %v1238_v6  ;;  %v1284_v0 = vadd.f32 -2.5, %v2132_v45  ;;  %v1286_v1 = vadd.f32 -2.5, %v2128_v22 }
  0xf1   : > { %v1550_v18 = vpop.eup %1549  ;;  %1563 = vpow2.f32 %v630_v8  ;;  %v876_v2 = vmul.f32 1.442695, %v864_v5  ;;  %v880_v3 = vmul.f32 1.442695, %v866_v7  ;;  %v621_v11 = vsub.f32 0.0, %v611_v60 }
  0xf2   : > { %v1552_v10 = vpop.eup %1551  ;;  %v1326_v25 = vpack.c.bf16 %v1550_v18, %v1548_v61  ;;  %1565 = vpow2.f32 %v634_v62  ;;  %v663_v26 = vsub.f32 0.0, %v653_v12  ;;  %v859_v17 = vmul.f32 %v1284_v0, %v1284_v0 }
  0xf3   : > { %v1554_v27 = vpop.eup %1553  ;;  %1567 = vpow2.f32 %v876_v2  ;;  %v640_v28 = vmul.f32 1.442695, %v621_v11  ;;  %v861_v29 = vmul.f32 %v1286_v1, %v1286_v1  ;;  %v1235_v30 = vadd.f32 2.5, %v2126_v16 }
  0xf4   : > { %v1556_v31 = vpop.eup %1555  ;;  %1327 = vmatpush1.bf16.msra.mxu1 %v1326_v25  ;;  %v1374_v32 = vpack.c.bf16 %v1554_v27, %v1552_v10  ;;  %1569 = vpow2.f32 %v880_v3  ;;  %v674_v34 = vmul.f32 1.442695, %v663_v26  ;;  %v869_v35 = vsub.f32 0.0, %v859_v17 }
  0xf5   : > { %v1558_v38 = vpop.eup %1557  ;;  %1571 = vpow2.f32 %v640_v28  ;;  %v871_v39 = vsub.f32 0.0, %v861_v29  ;;  %v610_v40 = vmul.f32 %v1235_v30, %v1235_v30  ;;  %v1237_v41 = vadd.f32 1.5, %v2090_v53 }
  0xf6   : > { %v1560_v33 = vpop.eup %1559  ;;  %1375 = vmatpush1.bf16.msra.mxu0 %v1374_v32  ;;  %v1328_v58 = vpack.c.bf16 %v1558_v38, %v1556_v31  ;;  %1573 = vpow2.f32 %v674_v34  ;;  %v886_v42 = vmul.f32 1.442695, %v869_v35  ;;  %v1283_v43 = vadd.f32 -2.5, %v2130_v37 }
  0xf7   : > { %v890_v13 = vmul.f32 1.442695, %v871_v39  ;;  %v620_v15 = vsub.f32 0.0, %v610_v40  ;;  %v652_v19 = vmul.f32 %v1237_v41, %v1237_v41  ;;  %v1285_v44 = vadd.f32 -2.5, %v2126_v16 }
  0xf8   : > { %v1562_v59 = vpop.eup %1561  ;;  %1329 = vmatprep.subr.bf16.mxu1 %v1328_v58  ;;  %1575 = vpow2.f32 %v886_v42  ;;  %v858_v14 = vmul.f32 %v1283_v43, %v1283_v43  ;;  %v1240_v23 = vadd.f32 1.5, %v2111_v20  ;;  %v1242_v4 = vadd.f32 1.5, %v2107_v36 }
  0xf9   : > { %v1376_v46 = vpack.c.bf16 %v1562_v59, %v1560_v33  ;;  %1577 = vpow2.f32 %v890_v13  ;;  %v638_v24 = vmul.f32 1.442695, %v620_v15  ;;  %v662_v47 = vsub.f32 0.0, %v652_v19 }
  0xfa   : > { %v860_v48 = vmul.f32 %v1285_v44, %v1285_v44  ;;  %v868_v49 = vsub.f32 0.0, %v858_v14  ;;  %v655_v50 = vmul.f32 %v1240_v23, %v1240_v23  ;;  %v657_v51 = vmul.f32 %v1242_v4, %v1242_v4 }
  0xfb   : > { %v1564_v9 = vpop.eup %1563  ;;  %1377 = vmatprep.subr.bf16.mxu0 %v1376_v46  ;;  %1579 = vpow2.f32 %v638_v24  ;;  %v672_v52 = vmul.f32 1.442695, %v662_v47  ;;  %v1288_v55 = vadd.f32 -3.5, %v2092_v54  ;;  %v1290_v56 = vadd.f32 -3.5, %v2111_v20 }
  0xfc   : > { %v1566_v57 = vpop.eup %1565  ;;  %v870_v6 = vsub.f32 0.0, %v860_v48  ;;  %v884_v8 = vmul.f32 1.442695, %v868_v49  ;;  %v665_v5 = vsub.f32 0.0, %v655_v50  ;;  %v667_v7 = vsub.f32 0.0, %v657_v51 }
  0xfd   : > { %v1568_v60 = vpop.eup %1567  ;;  %v1330_v61 = vpack.c.bf16 %v1566_v57, %v1564_v9  ;;  %1581 = vpow2.f32 %v672_v52  ;;  %v903_v62 = vmul.f32 %v1288_v55, %v1288_v55  ;;  %v905_v12 = vmul.f32 %v1290_v56, %v1290_v56 }
  0xfe   : > { %v1570_v0 = vpop.eup %1569  ;;  %1583 = vpow2.f32 %v884_v8  ;;  %v888_v1 = vmul.f32 1.442695, %v870_v6  ;;  %v678_v18 = vmul.f32 1.442695, %v665_v5  ;;  %v682_v2 = vmul.f32 1.442695, %v667_v7 }
  0xff   : > { %v1572_v3 = vpop.eup %1571  ;;  %1331 = vmatpush1.bf16.msra.mxu1 %v1330_v61  ;;  %v1378_v11 = vpack.c.bf16 %v1570_v0, %v1568_v60  ;;  %v913_v10 = vsub.f32 0.0, %v903_v62  ;;  %v915_v25 = vsub.f32 0.0, %v905_v12  ;;  %v1239_v26 = vadd.f32 1.5, %v2109_v21 }
 0x100   : > { %v1574_v17 = vpop.eup %1573  ;;  %1585 = vpow2.f32 %v888_v1  ;;  %v1241_v27 = vadd.f32 1.5, %v2105_v63  ;;  %v1287_v28 = vadd.f32 -3.5, %v2090_v53  ;;  %v1289_v29 = vadd.f32 -3.5, %v2109_v21 }
 0x101   : > { %1379 = vmatpush1.bf16.msra.mxu0 %v1378_v11  ;;  %v1332_v30 = vpack.c.bf16 %v1574_v17, %v1572_v3  ;;  %1587 = vpow2.f32 %v678_v18  ;;  %v924_v31 = vmul.f32 1.442695, %v913_v10  ;;  %v928_v32 = vmul.f32 1.442695, %v915_v25 }
 0x102   : > { %v1576_v34 = vpop.eup %1575  ;;  %1589 = vpow2.f32 %v682_v2  ;;  %v654_v35 = vmul.f32 %v1239_v26, %v1239_v26  ;;  %v656_v38 = vmul.f32 %v1241_v27, %v1241_v27  ;;  %v902_v39 = vmul.f32 %v1287_v28, %v1287_v28 }
 0x103   : > { %v1578_v40 = vpop.eup %1577  ;;  %1333 = vmatprep.subr.bf16.mxu1 %v1332_v30  ;;  %1591 = vpow2.f32 %v924_v31  ;;  %v904_v41 = vmul.f32 %v1289_v29, %v1289_v29  ;;  %v1244_v33 = vadd.f32 1.5, %v2132_v45  ;;  %v1246_v58 = vadd.f32 1.5, %v2128_v22 }
 0x104   : > { %v1380_v42 = vpack.c.bf16 %v1578_v40, %v1576_v34  ;;  %1593 = vpow2.f32 %v928_v32  ;;  %v664_v43 = vsub.f32 0.0, %v654_v35  ;;  %v666_v13 = vsub.f32 0.0, %v656_v38 }
 0x105   : > { %v1580_v15 = vpop.eup %1579  ;;  %v912_v19 = vsub.f32 0.0, %v902_v39  ;;  %v914_v44 = vsub.f32 0.0, %v904_v41  ;;  %v659_v59 = vmul.f32 %v1244_v33, %v1244_v33  ;;  %v661_v14 = vmul.f32 %v1246_v58, %v1246_v58 }
 0x106   : > { %1381 = vmatprep.subr.bf16.mxu0 %v1380_v42  ;;  %v676_v23 = vmul.f32 1.442695, %v664_v43  ;;  %v680_v4 = vmul.f32 1.442695, %v666_v13  ;;  %v1292_v46 = vadd.f32 -3.5, %v2107_v36  ;;  %v1294_v24 = vadd.f32 -3.5, %v2132_v45 }
 0x107   : > { %v1582_v47 = vpop.eup %1581  ;;  %v922_v48 = vmul.f32 1.442695, %v912_v19  ;;  %v926_v49 = vmul.f32 1.442695, %v914_v44  ;;  %v669_v50 = vsub.f32 0.0, %v659_v59  ;;  %v671_v51 = vsub.f32 0.0, %v661_v14 }
 0x108   : > { %v1584_v9 = vpop.eup %1583  ;;  %v1334_v52 = vpack.c.bf16 %v1582_v47, %v1580_v15  ;;  %1595 = vpow2.f32 %v676_v23  ;;  %v907_v55 = vmul.f32 %v1292_v46, %v1292_v46  ;;  %v909_v56 = vmul.f32 %v1294_v24, %v1294_v24 }
 0x109   : > { %1597 = vpow2.f32 %v680_v4  ;;  %v686_v57 = vmul.f32 1.442695, %v669_v50  ;;  %v690_v6 = vmul.f32 1.442695, %v671_v51  ;;  %v1243_v8 = vadd.f32 1.5, %v2130_v37 }
 0x10a   : > { %v1586_v5 = vpop.eup %1585  ;;  %1335 = vmatpush1.bf16.msra.mxu1 %v1334_v52  ;;  %1599 = vpow2.f32 %v922_v48  ;;  %v917_v7 = vsub.f32 0.0, %v907_v55  ;;  %v919_v60 = vsub.f32 0.0, %v909_v56  ;;  %v1245_v61 = vadd.f32 1.5, %v2126_v16 }
 0x10b   : > { %v1588_v62 = vpop.eup %1587  ;;  %v1382_v12 = vpack.c.bf16 %v1586_v5, %v1584_v9  ;;  %1601 = vpow2.f32 %v926_v49  ;;  %v658_v0 = vmul.f32 %v1243_v8, %v1243_v8  ;;  %v1291_v1 = vadd.f32 -3.5, %v2105_v63 }
 0x10c   : > { %v1590_v18 = vpop.eup %1589  ;;  %1603 = vpow2.f32 %v686_v57  ;;  %v932_v2 = vmul.f32 1.442695, %v917_v7  ;;  %v936_v3 = vmul.f32 1.442695, %v919_v60  ;;  %v660_v11 = vmul.f32 %v1245_v61, %v1245_v61 }
 0x10d   : > { %v1592_v10 = vpop.eup %1591  ;;  %1383 = vmatpush1.bf16.msra.mxu0 %v1382_v12  ;;  %v1336_v25 = vpack.c.bf16 %v1590_v18, %v1588_v62  ;;  %1605 = vpow2.f32 %v690_v6  ;;  %v668_v26 = vsub.f32 0.0, %v658_v0  ;;  %v1293_v17 = vadd.f32 -3.5, %v2130_v37 }
 0x10e   : > { %v1594_v27 = vpop.eup %1593  ;;  %1607 = vpow2.f32 %v932_v2  ;;  %v670_v28 = vsub.f32 0.0, %v660_v11  ;;  %v906_v29 = vmul.f32 %v1291_v1, %v1291_v1  ;;  %v1248_v30 = vadd.f32 0.5, %v2092_v54 }
 0x10f   : > { %1337 = vmatprep.subr.bf16.mxu1 %v1336_v25  ;;  %v1384_v31 = vpack.c.bf16 %v1594_v27, %v1592_v10  ;;  %1609 = vpow2.f32 %v936_v3  ;;  %v684_v32 = vmul.f32 1.442695, %v668_v26  ;;  %v908_v34 = vmul.f32 %v1293_v17, %v1293_v17 }
 0x110   : > { %v688_v35 = vmul.f32 1.442695, %v670_v28  ;;  %v916_v38 = vsub.f32 0.0, %v906_v29  ;;  %v1250_v39 = vadd.f32 0.5, %v2111_v20  ;;  %v703_v40 = vmul.f32 %v1248_v30, %v1248_v30 }
 0x111   : > { %1385 = vmatprep.subr.bf16.mxu0 %v1384_v31  ;;  %1611 = vpow2.f32 %v684_v32  ;;  %v918_v41 = vsub.f32 0.0, %v908_v34  ;;  %v1296_v33 = vadd.f32 -3.5, %v2128_v22  ;;  %v1247_v58 = vadd.f32 0.5, %v2090_v53 }
 0x112   : > { %v1596_v42 = vpop.eup %1595  ;;  %1613 = vpow2.f32 %v688_v35  ;;  %v930_v43 = vmul.f32 1.442695, %v916_v38  ;;  %v705_v13 = vmul.f32 %v1250_v39, %v1250_v39  ;;  %v713_v15 = vsub.f32 0.0, %v703_v40 }
 0x113   : > { %v1598_v19 = vpop.eup %1597  ;;  %v934_v44 = vmul.f32 1.442695, %v918_v41  ;;  %v911_v59 = vmul.f32 %v1296_v33, %v1296_v33  ;;  %v1249_v14 = vadd.f32 0.5, %v2109_v21  ;;  %v702_v23 = vmul.f32 %v1247_v58, %v1247_v58 }
 0x114   : > { %v1600_v4 = vpop.eup %1599  ;;  %v1338_v46 = vpack.c.bf16 %v1598_v19, %v1596_v42  ;;  %1615 = vpow2.f32 %v930_v43  ;;  %v715_v24 = vsub.f32 0.0, %v705_v13  ;;  %v724_v47 = vmul.f32 1.442695, %v713_v15 }
 0x115   : > { %v1602_v48 = vpop.eup %1601  ;;  %1617 = vpow2.f32 %v934_v44  ;;  %v921_v49 = vsub.f32 0.0, %v911_v59  ;;  %v704_v50 = vmul.f32 %v1249_v14, %v1249_v14  ;;  %v712_v51 = vsub.f32 0.0, %v702_v23 }
 0x116   : > { %v1604_v9 = vpop.eup %1603  ;;  %1339 = vmatpush1.bf16.msra.mxu1 %v1338_v46  ;;  %v1386_v52 = vpack.c.bf16 %v1602_v48, %v1600_v4  ;;  %1619 = vpow2.f32 %v724_v47  ;;  %v728_v55 = vmul.f32 1.442695, %v715_v24  ;;  %v1295_v56 = vadd.f32 -3.5, %v2126_v16 }
 0x117   : > { %v1606_v57 = vpop.eup %1605  ;;  %v940_v6 = vmul.f32 1.442695, %v921_v49  ;;  %v714_v8 = vsub.f32 0.0, %v704_v50  ;;  %v722_v5 = vmul.f32 1.442695, %v712_v51  ;;  %v1252_v7 = vadd.f32 0.5, %v2107_v36 }
 0x118   : > { %v1608_v60 = vpop.eup %1607  ;;  %1387 = vmatpush1.bf16.msra.mxu0 %v1386_v52  ;;  %v1340_v61 = vpack.c.bf16 %v1606_v57, %v1604_v9  ;;  %1621 = vpow2.f32 %v728_v55  ;;  %v910_v62 = vmul.f32 %v1295_v56, %v1295_v56  ;;  %v1254_v12 = vadd.f32 0.5, %v2132_v45 }
 0x119   : > { %v1610_v0 = vpop.eup %1609  ;;  %1623 = vpow2.f32 %v940_v6  ;;  %v726_v1 = vmul.f32 1.442695, %v714_v8  ;;  %v707_v18 = vmul.f32 %v1252_v7, %v1252_v7  ;;  %v1251_v2 = vadd.f32 0.5, %v2105_v63 }
 0x11a   : > { %1341 = vmatprep.subr.bf16.mxu1 %v1340_v61  ;;  %v1388_v3 = vpack.c.bf16 %v1610_v0, %v1608_v60  ;;  %1625 = vpow2.f32 %v722_v5  ;;  %v920_v11 = vsub.f32 0.0, %v910_v62  ;;  %v709_v10 = vmul.f32 %v1254_v12, %v1254_v12 }
 0x11b   : > { %v1612_v25 = vpop.eup %1611  ;;  %1627 = vpow2.f32 %v726_v1  ;;  %v717_v26 = vsub.f32 0.0, %v707_v18  ;;  %v1253_v17 = vadd.f32 0.5, %v2130_v37  ;;  %v706_v27 = vmul.f32 %v1251_v2, %v1251_v2 }
 0x11c   : > { %v1614_v28 = vpop.eup %1613  ;;  %1389 = vmatprep.subr.bf16.mxu0 %v1388_v3  ;;  %v938_v29 = vmul.f32 1.442695, %v920_v11  ;;  %v719_v30 = vsub.f32 0.0, %v709_v10  ;;  %v1256_v31 = vadd.f32 0.5, %v2128_v22  ;;  %v1258_v32 = vadd.f32 -0.5, %v2092_v54 }
 0x11d   : > { %v1342_v34 = vpack.c.bf16 %v1614_v28, %v1612_v25  ;;  %v732_v35 = vmul.f32 1.442695, %v717_v26  ;;  %v708_v38 = vmul.f32 %v1253_v17, %v1253_v17  ;;  %v716_v39 = vsub.f32 0.0, %v706_v27 }
 0x11e   : > { %v1616_v40 = vpop.eup %1615  ;;  %1629 = vpow2.f32 %v938_v29  ;;  %v736_v41 = vmul.f32 1.442695, %v719_v30  ;;  %v711_v33 = vmul.f32 %v1256_v31, %v1256_v31  ;;  %v753_v58 = vmul.f32 %v1258_v32, %v1258_v32 }
 0x11f   : > { %v1618_v42 = vpop.eup %1617  ;;  %1343 = vmatpush1.bf16.msra.mxu1 %v1342_v34  ;;  %1631 = vpow2.f32 %v732_v35  ;;  %v718_v43 = vsub.f32 0.0, %v708_v38  ;;  %v730_v13 = vmul.f32 1.442695, %v716_v39  ;;  %v1255_v15 = vadd.f32 0.5, %v2126_v16 }
 0x120   : > { %v1620_v19 = vpop.eup %1619  ;;  %v1390_v44 = vpack.c.bf16 %v1618_v42, %v1616_v40  ;;  %1633 = vpow2.f32 %v736_v41  ;;  %v721_v59 = vsub.f32 0.0, %v711_v33  ;;  %v763_v14 = vsub.f32 0.0, %v753_v58 }
 0x121   : > { %1635 = vpow2.f32 %v730_v13  ;;  %v734_v23 = vmul.f32 1.442695, %v718_v43  ;;  %v710_v4 = vmul.f32 %v1255_v15, %v1255_v15  ;;  %v1257_v46 = vadd.f32 -0.5, %v2090_v53 }
 0x122   : > { %v1622_v24 = vpop.eup %1621  ;;  %1391 = vmatpush1.bf16.msra.mxu0 %v1390_v44  ;;  %v740_v47 = vmul.f32 1.442695, %v721_v59  ;;  %v774_v48 = vmul.f32 1.442695, %v763_v14  ;;  %v1260_v49 = vadd.f32 -0.5, %v2111_v20  ;;  %v1262_v50 = vadd.f32 -0.5, %v2107_v36 }
 0x123   : > { %v1624_v51 = vpop.eup %1623  ;;  %v1344_v9 = vpack.c.bf16 %v1622_v24, %v1620_v19  ;;  %1637 = vpow2.f32 %v734_v23  ;;  %v720_v52 = vsub.f32 0.0, %v710_v4  ;;  %v752_v55 = vmul.f32 %v1257_v46, %v1257_v46 }
 0x124   : > { %v1626_v56 = vpop.eup %1625  ;;  %1050 = vmatprep.subr.mxu0 %v1624_v51  ;;  %1639 = vpow2.f32 %v740_v47  ;;  %v755_v57 = vmul.f32 %v1260_v49, %v1260_v49  ;;  %v757_v6 = vmul.f32 %v1262_v50, %v1262_v50  ;;  %v1259_v8 = vadd.f32 -0.5, %v2109_v21  ;;  %v944_v49 = vld [vmem:[%s2271_s3 + $0x10] sm:$0xff] }
 0x125   : > { %v1628_v5 = vpop.eup %1627  ;;  %1345 = vmatprep.subr.bf16.mxu1 %v1344_v9  ;;  %1641 = vpow2.f32 %v774_v48  ;;  %v738_v7 = vmul.f32 1.442695, %v720_v52  ;;  %v762_v60 = vsub.f32 0.0, %v752_v55  ;;  %v1261_v61 = vadd.f32 -0.5, %v2105_v63 }
 0x126   : > { %v1346_v36 = vpack.c.bf16 %v1628_v5, %v1626_v56  ;;  %v765_v62 = vsub.f32 0.0, %v755_v57  ;;  %v767_v12 = vsub.f32 0.0, %v757_v6  ;;  %v754_v0 = vmul.f32 %v1259_v8, %v1259_v8 }
 0x127   : > { %1643 = vpow2.f32 %v738_v7  ;;  %v772_v1 = vmul.f32 1.442695, %v762_v60  ;;  %v756_v18 = vmul.f32 %v1261_v61, %v1261_v61  ;;  %v1264_v2 = vadd.f32 -0.5, %v2132_v45 }
 0x128   : > { %v1630_v3 = vpop.eup %1629  ;;  %1347 = vmatpush1.bf16.msra.mxu1 %v1346_v36  ;;  %v778_v11 = vmul.f32 1.442695, %v765_v62  ;;  %v782_v10 = vmul.f32 1.442695, %v767_v12  ;;  %v764_v25 = vsub.f32 0.0, %v754_v0  ;;  %v1266_v26 = vadd.f32 -0.5, %v2128_v22 }
 0x129   : > { %v1632_v17 = vpop.eup %1631  ;;  %1051 = vmatpush1.msra.mxu0 %v1630_v3  ;;  %1645 = vpow2.f32 %v772_v1  ;;  %v766_v63 = vsub.f32 0.0, %v756_v18  ;;  %v759_v27 = vmul.f32 %v1264_v2, %v1264_v2  ;;  %v1263_v28 = vadd.f32 -0.5, %v2130_v37 }
 0x12a   : > { %v1634_v29 = vpop.eup %1633  ;;  %1647 = vpow2.f32 %v778_v11  ;;  %v776_v30 = vmul.f32 1.442695, %v764_v25  ;;  %v761_v31 = vmul.f32 %v1266_v26, %v1266_v26  ;;  %v1265_v45 = vadd.f32 -0.5, %v2126_v16 }
 0x12b   : > { %v1636_v32 = vpop.eup %1635  ;;  %v1348_v34 = vpack.c.bf16 %v1634_v29, %v1632_v17  ;;  %1649 = vpow2.f32 %v782_v10  ;;  %v780_v35 = vmul.f32 1.442695, %v766_v63  ;;  %v769_v38 = vsub.f32 0.0, %v759_v27  ;;  %v942_v63 = vld [vmem:[%s2271_s3] sm:$0xff]  ;;  %v949_v29 = vpop.permute.xlu0 %948 }
 0x12c   : > { %1651 = vpow2.f32 %v776_v30  ;;  %v771_v22 = vsub.f32 0.0, %v761_v31  ;;  %v758_v39 = vmul.f32 %v1263_v28, %v1263_v28  ;;  %v760_v40 = vmul.f32 %v1265_v45, %v1265_v45 }
 0x12d   : > { %v1638_v41 = vpop.eup %1637  ;;  %1349 = vmatprep.subr.bf16.mxu1 %v1348_v34  ;;  %1653 = vpow2.f32 %v780_v35  ;;  %v786_v33 = vmul.f32 1.442695, %v769_v38  ;;  %v1268_v37 = vadd.f32 -1.5, %v2092_v54  ;;  %v1270_v58 = vadd.f32 -1.5, %v2111_v20 }
 0x12e   : > { %v1640_v42 = vpop.eup %1639  ;;  %v1350_v43 = vpack.c.bf16 %v1638_v41, %v1636_v32  ;;  %v790_v16 = vmul.f32 1.442695, %v771_v22  ;;  %v768_v13 = vsub.f32 0.0, %v758_v39  ;;  %v770_v15 = vsub.f32 0.0, %v760_v40 }
 0x12f   : > { %v1642_v19 = vpop.eup %1641  ;;  %1655 = vpow2.f32 %v786_v33  ;;  %v803_v44 = vmul.f32 %v1268_v37, %v1268_v37  ;;  %v805_v59 = vmul.f32 %v1270_v58, %v1270_v58  ;;  %v1267_v14 = vadd.f32 -1.5, %v2090_v53 }
 0x130   : > { %1351 = vmatpush1.bf16.msra.mxu1 %v1350_v43  ;;  %v1352_v23 = vpack.c.bf16 %v1642_v19, %v1640_v42  ;;  %1657 = vpow2.f32 %v790_v16  ;;  %v784_v4 = vmul.f32 1.442695, %v768_v13  ;;  %v788_v46 = vmul.f32 1.442695, %v770_v15 }
 0x131   : > { %v1644_v24 = vpop.eup %1643  ;;  %v813_v54 = vsub.f32 0.0, %v803_v44  ;;  %v815_v47 = vsub.f32 0.0, %v805_v59  ;;  %v1269_v20 = vadd.f32 -1.5, %v2109_v21  ;;  %v802_v48 = vmul.f32 %v1267_v14, %v1267_v14 }
 0x132   : > { %1353 = vmatprep.subr.bf16.mxu1 %v1352_v23  ;;  %1659 = vpow2.f32 %v784_v4  ;;  %v1789_v52 = vmov 0.0  }
 0x133   : > { %v1646_v50 = vpop.eup %1645  ;;  %1661 = vpow2.f32 %v788_v46  ;;  %v824_v53 = vmul.f32 1.442695, %v813_v54  ;;  %v828_v51 = vmul.f32 1.442695, %v815_v47  ;;  %v804_v9 = vmul.f32 %v1269_v20, %v1269_v20  ;;  %1090 = vmatprep.mubr.f32.mxu0 %v1789_v52 }
 0x134   : > { %v1648_v55 = vpop.eup %1647  ;;  %v1354_v56 = vpack.c.bf16 %v1646_v50, %v1644_v24  ;;  %v812_v57 = vsub.f32 0.0, %v802_v48  ;;  %1297 = vmatmul.mubr.msk.f32.vlgmr.msra.gmra.mrb[0].mxu0 %vm951_vm1, %v944_v49 }
 0x135   : > { %v1650_v21 = vpop.eup %1649  ;;  %1663 = vpow2.f32 %v824_v53  ;;  %v814_v6 = vsub.f32 0.0, %v804_v9 }
 0x136   : > { %v1652_v8 = vpop.eup %1651  ;;  %1355 = vmatpush1.bf16.msra.mxu1 %v1354_v56  ;;  %v1356_v5 = vpack.c.bf16 %v1650_v21, %v1648_v55  ;;  %1665 = vpow2.f32 %v828_v51  ;;  %v822_v7 = vmul.f32 1.442695, %v812_v57 }
 0x137   : > { %v1654_v60 = vpop.eup %1653  ;;  %v826_v61 = vmul.f32 1.442695, %v814_v6 }
 0x138   : > { %1357 = vmatprep.subr.bf16.mxu1 %v1356_v5  ;;  %v1358_v36 = vpack.c.bf16 %v1654_v60, %v1652_v8  ;;  %1667 = vpow2.f32 %v822_v7 }
 0x139   : > { %v1656_v62 = vpop.eup %1655  ;;  %1669 = vpow2.f32 %v826_v61 }
 0x13a   : > { %v1658_v12 = vpop.eup %1657  ;;  %1359 = vmatpush1.bf16.msra.mxu1 %v1358_v36 }
 0x13b   : > { %v1360_v0 = vpack.c.bf16 %v1658_v12, %v1656_v62 }
 0x13c   : > { %v1660_v1 = vpop.eup %1659 }
 0x13d   : > { %v1662_v18 = vpop.eup %1661  ;;  %1361 = vmatprep.subr.bf16.mxu1 %v1360_v0 }
 0x13e   : > { %v1362_v2 = vpack.c.bf16 %v1662_v18, %v1660_v1 }
 0x13f   : > { %v1664_v3 = vpop.eup %1663 }
 0x140   : > { %v1666_v11 = vpop.eup %1665  ;;  %1363 = vmatpush1.bf16.msra.mxu1 %v1362_v2 }
 0x141   : > { %v1364_v10 = vpack.c.bf16 %v1666_v11, %v1664_v3 }
 0x142   : > { %v1668_v25 = vpop.eup %1667 }
 0x143   : > { %v1670_v26 = vpop.eup %1669  ;;  %1365 = vmatprep.subr.bf16.mxu1 %v1364_v10 }
 0x144   : > { %v1366_v17 = vpack.c.bf16 %v1670_v26, %v1668_v25 }
 0x146   : > { %1367 = vmatpush1.bf16.msra.mxu1 %v1366_v17 }
 0x149   : > { %1020 = vmatmul.mubr.f32.vlgmr.msra.gmra.mrb[0].mxu1 %v942_v63 }
 0x207   : > { %v1092_v27 = vpop.f32.mrb[0].mxu0 }
 0x208   : > { %v1094_v28 = vpop.f32.mrb[1].mxu0 }
 0x21c   : > { %v1021_v30 = vpop.f32.mrb[0].mxu1 }
 0x21d   : > { %v1022_v31 = vadd.f32 %v1021_v30, %v949_v29  ;;  %v1023_v45 = vpop.f32.mrb[1].mxu1 }
 0x21e   : > { %v1024_v32 = vadd.f32 %v1023_v45, %v949_v29 }
 0x21f   : > { %v1093_v34 = vadd.f32 %v1092_v27, %v1022_v31 }
 0x220   : > { %v1095_v35 = vadd.f32 %v1094_v28, %v1024_v32 }
 0x221   : > { %1097 = vst [vmem:[%s260_s17] sm:$0xff] %v1093_v34 }
 0x222   : > { %1098 = vst [vmem:[%s260_s17 + $0x8] sm:$0xff] %v1095_v35 }
 0x223   : > { %1714 = shalt.err (!%p1711_p4)
}
 0x224   : > { %s1715_s28 = scalar_lea.hbm %s2219_s13, 256  ;;  %s1719_s10 = scalar_lea.hbm %s2273_s5, 512 }
 0x225   : > { %p1716_p6 = scmp.ne.s32.totalorder %s2219_s13, %s1715_s28  ;;  %p1720_p12 = scmp.lt.u32.totalorder %s2219_s13, %s2273_s5 }
 0x226   : > { %p1721_p1 = scmp.lt.u32.totalorder %s1719_s10, %s1715_s28  ;;  %p1723_p8 = scmp.lt.u32.totalorder %s1715_s28, %s2219_s13 }
 0x227   : > { %p1717_p7 = pnand %p1716_p6, %p2281_p9 }
 0x228   : > { %p1722_p3 = por %p1721_p1, %p1720_p12 }
 0x229   : > { %p1718_p10 = pneg %p1717_p7 }
 0x22a   : > { %p1724_p11 = por %p1723_p8, %p1722_p3 }
 0x22c   : > { %p1725_p0 = pnand %p1724_p11, %p1718_p10 }
 0x22e   : > { %1728 = shalt.err (!%p1725_p0)
}
 0x22f   : > { %1401 = dma.vmem_to_hbm [thread:$0]  (%p2281_p9), %s2221_s24, 256, %s2219_s13, %s1100_s14  }
 0x230 PF: > { %s1128_s17 = sand.u32 1, %s1763_s18   ;;  %p2282_p5 = scmp.ne.s32.totalorder %s2278_s8, 0 }
 0x231   : > { %p2283_p13 = scmp.ge.s32.totalorder %s1783_s23, 2  ;;  %s1129_s30 = scalar_lea.sflag [#allocation4], %s1128_s17 }
 0x233   : > { %p1408_p2 = pnand %p2283_p13, %p2282_p5 }
 0x235   : > { %1758 = dma.done.wait (!%p1408_p2), %s1129_s30, 256  }
 0x236   : > { %1760 = vsyncadd (!%p1408_p2), %s1129_s30, 4294967040  ;;  %s21_s23 = sadd.s32 1, %s1783_s23   ;;  %s2284_s18 = smov %s1767_s19 }
 0x237   : > { %p18_p4 = scmp.ge.s32.totalorder %s21_s23, 4   ;;  %s2285_s19 = smov %s1771_s20 }
 0x238   : > { %s2286_s20 = smov %s1877_s7  ;;  %s2287_s21 = smov %s1779_s22 }
 0x239   : > { %s2288_s22 = smov %s2290_s26  ;;  %20 = sbr.rel (!%p18_p4) target bundleno = 6 (0x6), region = 85 }
 0x240   :  { %1134 = vsyncpa [#allocation3], 1 }
 0x241   :  { %1136 = vsyncpa [#allocation3 + $0x1], 1 }
 0x242   :  { %1137 = vsyncpa [#allocation4], 1 }
 0x243   :  { %1139 = vsyncpa [#allocation4 + $0x1], 1 }

</bundles_post_ra>
